<compile_context>
chip_gen: v5e
topology: v5e:2x2
jax: 0.10.0
libtpu: 0.0.40
codegen_flags: <defaults>
</compile_context>

<pallas_src>
import functools

import jax
import jax.numpy as jnp
from jax import lax
from jax.experimental import pallas as pl
from jax.experimental.pallas import tpu as pltpu


def _conv_attention_kernel(x_ref, w1_ref, b1_ref, w2_ref, b2_ref, o_ref,
                           xpad_ref, ypad_ref, col1_ref, col2_ref,
                           *, H, W, Cin, Cmid):
    # x_ref : (1, Cin, H*W)        dense input rows, lane-dense
    # w1_ref: (Cmid, 9*Cin)        BN-scale-folded conv1 weight (matmul form)
    # b1_ref: (Cmid, 1)            folded BN1 bias
    # w2_ref: (Cmid, 9*Cmid)       BN-scale-folded conv2 weight
    # b2_ref: (Cmid, 1)            folded BN2 bias
    # o_ref : (1, Cmid, H*W)       dense output rows, lane-dense
    # xpad_ref: (Cin,  (H+2)*(W+2)+2)  padded input image, flat (row stride W+2)
    # ypad_ref: (Cmid, (H+2)*(W+2)+2)  padded intermediate, flat
    # col1_ref: (9*Cin,  H*(W+2))      im2col for conv1
    # col2_ref: (9*Cmid, H*(W+2))      im2col for conv2
    f32 = jnp.float32
    Wp = W + 2                       # padded row stride
    Nw = H * Wp                      # "wide" output length (2 gap cols per row)
    base = Wp + 1                    # flat offset of padded-image position (1, 1)

    # Borders / gap columns must be zero every grid step (cheap VMEM stores).
    xpad_ref[...] = jnp.zeros_like(xpad_ref)
    ypad_ref[...] = jnp.zeros_like(ypad_ref)

    # Scatter dense input rows (stride W) into the padded flat image (stride W+2).
    x = x_ref[0].astype(f32)                               # (Cin, H*W)
    for h in range(H):
        xpad_ref[:, base + h * Wp: base + h * Wp + W] = x[:, h * W:(h + 1) * W]

    # ---- conv1 + BN + ReLU -------------------------------------------------
    # Tap (kh, kw) of the padded image is ONE contiguous flat slice of length Nw.
    for kh in range(3):
        for kw in range(3):
            k = kh * 3 + kw
            off = kh * Wp + kw
            col1_ref[k * Cin:(k + 1) * Cin, :] = xpad_ref[:, off:off + Nw]
    y1 = jnp.dot(w1_ref[...], col1_ref[...], preferred_element_type=f32)  # (Cmid, Nw)
    y1 = jnp.maximum(y1 + b1_ref[...], 0.0)

    # Intermediate never leaves VMEM: write its valid columns (halo offset) into
    # the second padded buffer; gap columns / borders stay zero.
    for h in range(H):
        ypad_ref[:, base + h * Wp: base + h * Wp + W] = y1[:, h * Wp: h * Wp + W]

    # ---- conv2 + BN + ReLU -------------------------------------------------
    for kh in range(3):
        for kw in range(3):
            k = kh * 3 + kw
            off = kh * Wp + kw
            col2_ref[k * Cmid:(k + 1) * Cmid, :] = ypad_ref[:, off:off + Nw]
    y2 = jnp.dot(w2_ref[...], col2_ref[...], preferred_element_type=f32)  # (Cmid, Nw)
    y2 = jnp.maximum(y2 + b2_ref[...], 0.0)

    # Gather wide rows back to dense (C, H*W) in the lane-dense output block.
    for h in range(H):
        o_ref[0, :, h * W:(h + 1) * W] = \
            y2[:, h * Wp: h * Wp + W].astype(o_ref.dtype)


def fold_bn(gamma, beta, running_mean, running_var, eps=1e-5):
    scale = gamma / jnp.sqrt(running_var + eps)
    bias = beta - running_mean * scale
    return scale, bias


def _fold_conv_bn(w_hwio, bn):
    """Fold eval-mode BN scale into the conv weight.

    Returns the weight in (Cout, 9*Cin) matmul form (rows match the in-kernel
    im2col ordering: (kh, kw) outer, cin inner) and the (Cout, 1) bias, both f32.
    """
    scale, bias = fold_bn(*bn)
    kh, kw, cin, cout = w_hwio.shape
    w = w_hwio.astype(jnp.float32) * scale[None, None, None, :].astype(jnp.float32)
    w2d = w.reshape(kh * kw * cin, cout).T                 # (Cout, 9*Cin)
    return w2d, bias.reshape(cout, 1).astype(jnp.float32)


def conv_attention_forward(x_nchw, params):
    """ConvAttention.forward: (conv3x3 + BN + ReLU) x 2, fused in one kernel."""
    B, Cin, H, W = x_nchw.shape
    Cmid = params["w1"].shape[-1]
    w1m, b1 = _fold_conv_bn(params["w1"], params["bn1"])
    w2m, b2 = _fold_conv_bn(params["w2"], params["bn2"])

    Wp = W + 2
    Nw = H * Wp
    pad_len = (H + 2) * Wp + 2        # flat padded image + slack for tap overshoot

    kernel = functools.partial(_conv_attention_kernel, H=H, W=W, Cin=Cin, Cmid=Cmid)
    x_flat = x_nchw.reshape(B, Cin, H * W)                 # free: NCHW is contiguous

    out_flat = pl.pallas_call(
        kernel,
        out_shape=jax.ShapeDtypeStruct((B, Cmid, H * W), x_nchw.dtype),
        grid_spec=pltpu.PrefetchScalarGridSpec(
            num_scalar_prefetch=0,
            grid=(B,),
            in_specs=[
                pl.BlockSpec((1, Cin, H * W), lambda b: (b, 0, 0)),
                pl.BlockSpec((Cmid, 9 * Cin), lambda b: (0, 0)),
                pl.BlockSpec((Cmid, 1), lambda b: (0, 0)),
                pl.BlockSpec((Cmid, 9 * Cmid), lambda b: (0, 0)),
                pl.BlockSpec((Cmid, 1), lambda b: (0, 0)),
            ],
            out_specs=pl.BlockSpec((1, Cmid, H * W), lambda b: (b, 0, 0)),
            scratch_shapes=[
                pltpu.VMEM((Cin, pad_len), jnp.float32),      # padded input (flat)
                pltpu.VMEM((Cmid, pad_len), jnp.float32),     # padded intermediate
                pltpu.VMEM((9 * Cin, Nw), jnp.float32),       # im2col conv1
                pltpu.VMEM((9 * Cmid, Nw), jnp.float32),      # im2col conv2
            ]),
        compiler_params=pltpu.CompilerParams(
            dimension_semantics=("parallel",)),
    )(x_flat, w1m, b1, w2m, b2)

    return out_flat.reshape(B, Cmid, H, W)


def _reference_forward(x_nchw, params):
    """Pure-JAX reference (lax.conv + unfused BN) to validate the Pallas kernel."""
    def block(x, w_hwio, bn):
        s, b = fold_bn(*bn)
        y = lax.conv_general_dilated(
            x, w_hwio, window_strides=(1, 1), padding="SAME",
            dimension_numbers=("NCHW", "HWIO", "NCHW"))
        y = y * s[None, :, None, None] + b[None, :, None, None]
        return jnp.maximum(y, 0.0)
    x = block(x_nchw, params["w1"], params["bn1"])
    x = block(x, params["w2"], params["bn2"])
    return x


if __name__ == "__main__":
    key = jax.random.PRNGKey(0)
    B, Cin, H, W = 2, 4, 16, 16
    mid = 8                                        # mid_channels == out_channels

    ks = jax.random.split(key, 8)
    x = jax.random.normal(ks[0], (B, Cin, H, W), dtype=jnp.float32)

    # Conv weights (HWIO); PyTorch layout would be (out, in, 3, 3) = OIHW.
    w1 = jax.random.normal(ks[1], (3, 3, Cin, mid), dtype=jnp.float32) * 0.2
    w2 = jax.random.normal(ks[2], (3, 3, mid, mid), dtype=jnp.float32) * 0.2

    # BatchNorm parameters (non-trivial so BN actually does work).
    bn1 = (1.0 + 0.1 * jax.random.normal(ks[3], (mid,)),            # gamma
           0.1 * jax.random.normal(ks[4], (mid,)),                  # beta
           0.05 * jax.random.normal(ks[5], (mid,)),                 # running_mean
           jnp.abs(1.0 + 0.1 * jax.random.normal(ks[6], (mid,))))   # running_var
    bn2 = (jnp.ones((mid,)), jnp.zeros((mid,)),
           0.05 * jax.random.normal(ks[7], (mid,)), jnp.ones((mid,)))

    params = {"w1": w1, "bn1": bn1, "w2": w2, "bn2": bn2}

    out = jax.block_until_ready(conv_attention_forward(x, params))
    ref = jax.block_until_ready(_reference_forward(x, params))

    assert out.shape == (B, mid, H, W), out.shape
    assert jnp.allclose(out, ref, atol=1e-4, rtol=1e-4), \
        float(jnp.max(jnp.abs(out - ref)))
    print("KERNEL_OK")
</pallas_src>

<mosaic_0001>
module attributes {stable_mosaic.version = 11 : i64} {
  func.func @_conv_attention_kernel(%arg0: i32, %arg1: memref<1x4x256xf32, #tpu.memory_space<vmem>>, %arg2: memref<8x36xf32, #tpu.memory_space<vmem>>, %arg3: memref<8x1xf32, #tpu.memory_space<vmem>>, %arg4: memref<8x72xf32, #tpu.memory_space<vmem>>, %arg5: memref<8x1xf32, #tpu.memory_space<vmem>>, %arg6: memref<1x8x256xf32, #tpu.memory_space<vmem>>, %arg7: memref<4x326xf32, #tpu.memory_space<vmem>>, %arg8: memref<8x326xf32, #tpu.memory_space<vmem>>, %arg9: memref<36x288xf32, #tpu.memory_space<vmem>>, %arg10: memref<72x288xf32, #tpu.memory_space<vmem>>) attributes {dimension_semantics = [#tpu.dimension_semantics<parallel>], iteration_bounds = array<i64: 2>, scalar_prefetch = 0 : i64, scratch_operands = 4 : i64, tpu.core_type = #tpu.core_type<tc>, window_params = [{transform_indices = @transform_0, window_bounds = array<i64: 1, 4, 256>}, {pipeline_mode = #tpu.pipeline_mode<synchronous>, transform_indices = @transform_1, window_bounds = array<i64: 8, 36>}, {pipeline_mode = #tpu.pipeline_mode<synchronous>, transform_indices = @transform_2, window_bounds = array<i64: 8, 1>}, {pipeline_mode = #tpu.pipeline_mode<synchronous>, transform_indices = @transform_3, window_bounds = array<i64: 8, 72>}, {pipeline_mode = #tpu.pipeline_mode<synchronous>, transform_indices = @transform_4, window_bounds = array<i64: 8, 1>}, {transform_indices = @transform_5, window_bounds = array<i64: 1, 8, 256>}]} {
    %cst = arith.constant 0.000000e+00 : f32
    %0 = vector.broadcast %cst : f32 to vector<4x326xf32>
    %c0 = arith.constant 0 : index
    %c0_0 = arith.constant 0 : index
    %1 = vector.load %arg7[%c0, %c0_0] : memref<4x326xf32, #tpu.memory_space<vmem>>, vector<4x326xf32>
    tpu.vector_store %arg7[%c0, %c0_0], %0 {strides = array<i32>} : memref<4x326xf32, #tpu.memory_space<vmem>>, vector<4x326xf32>,
    %cst_1 = arith.constant 0.000000e+00 : f32
    %2 = vector.broadcast %cst_1 : f32 to vector<8x326xf32>
    %c0_2 = arith.constant 0 : index
    %c0_3 = arith.constant 0 : index
    %3 = vector.load %arg8[%c0_2, %c0_3] : memref<8x326xf32, #tpu.memory_space<vmem>>, vector<8x326xf32>
    tpu.vector_store %arg8[%c0_2, %c0_3], %2 {strides = array<i32>} : memref<8x326xf32, #tpu.memory_space<vmem>>, vector<8x326xf32>,
    %c0_4 = arith.constant 0 : index
    %c0_5 = arith.constant 0 : index
    %c0_6 = arith.constant 0 : index
    %4 = vector.load %arg1[%c0_4, %c0_5, %c0_6] : memref<1x4x256xf32, #tpu.memory_space<vmem>>, vector<1x4x256xf32>
    %5 = vector.shape_cast %4 : vector<1x4x256xf32> to vector<4x256xf32>
    %6 = vector.extract_strided_slice %5 {offsets = [0, 0], sizes = [4, 16], strides = [1, 1]} : vector<4x256xf32> to vector<4x16xf32>
    %c0_7 = arith.constant 0 : index
    %c19 = arith.constant 19 : index
    %7 = vector.load %arg7[%c0_7, %c19] : memref<4x326xf32, #tpu.memory_space<vmem>>, vector<4x16xf32>
    tpu.vector_store %arg7[%c0_7, %c19], %6 {strides = array<i32>} : memref<4x326xf32, #tpu.memory_space<vmem>>, vector<4x16xf32>,
    %8 = vector.extract_strided_slice %5 {offsets = [0, 16], sizes = [4, 16], strides = [1, 1]} : vector<4x256xf32> to vector<4x16xf32>
    %c0_8 = arith.constant 0 : index
    %c37 = arith.constant 37 : index
    %9 = vector.load %arg7[%c0_8, %c37] : memref<4x326xf32, #tpu.memory_space<vmem>>, vector<4x16xf32>
    tpu.vector_store %arg7[%c0_8, %c37], %8 {strides = array<i32>} : memref<4x326xf32, #tpu.memory_space<vmem>>, vector<4x16xf32>,
    %10 = vector.extract_strided_slice %5 {offsets = [0, 32], sizes = [4, 16], strides = [1, 1]} : vector<4x256xf32> to vector<4x16xf32>
    %c0_9 = arith.constant 0 : index
    %c55 = arith.constant 55 : index
    %11 = vector.load %arg7[%c0_9, %c55] : memref<4x326xf32, #tpu.memory_space<vmem>>, vector<4x16xf32>
    tpu.vector_store %arg7[%c0_9, %c55], %10 {strides = array<i32>} : memref<4x326xf32, #tpu.memory_space<vmem>>, vector<4x16xf32>,
    %12 = vector.extract_strided_slice %5 {offsets = [0, 48], sizes = [4, 16], strides = [1, 1]} : vector<4x256xf32> to vector<4x16xf32>
    %c0_10 = arith.constant 0 : index
    %c73 = arith.constant 73 : index
    %13 = vector.load %arg7[%c0_10, %c73] : memref<4x326xf32, #tpu.memory_space<vmem>>, vector<4x16xf32>
    tpu.vector_store %arg7[%c0_10, %c73], %12 {strides = array<i32>} : memref<4x326xf32, #tpu.memory_space<vmem>>, vector<4x16xf32>,
    %14 = vector.extract_strided_slice %5 {offsets = [0, 64], sizes = [4, 16], strides = [1, 1]} : vector<4x256xf32> to vector<4x16xf32>
    %c0_11 = arith.constant 0 : index
    %c91 = arith.constant 91 : index
    %15 = vector.load %arg7[%c0_11, %c91] : memref<4x326xf32, #tpu.memory_space<vmem>>, vector<4x16xf32>
    tpu.vector_store %arg7[%c0_11, %c91], %14 {strides = array<i32>} : memref<4x326xf32, #tpu.memory_space<vmem>>, vector<4x16xf32>,
    %16 = vector.extract_strided_slice %5 {offsets = [0, 80], sizes = [4, 16], strides = [1, 1]} : vector<4x256xf32> to vector<4x16xf32>
    %c0_12 = arith.constant 0 : index
    %c109 = arith.constant 109 : index
    %17 = vector.load %arg7[%c0_12, %c109] : memref<4x326xf32, #tpu.memory_space<vmem>>, vector<4x16xf32>
    tpu.vector_store %arg7[%c0_12, %c109], %16 {strides = array<i32>} : memref<4x326xf32, #tpu.memory_space<vmem>>, vector<4x16xf32>,
    %18 = vector.extract_strided_slice %5 {offsets = [0, 96], sizes = [4, 16], strides = [1, 1]} : vector<4x256xf32> to vector<4x16xf32>
    %c0_13 = arith.constant 0 : index
    %c127 = arith.constant 127 : index
    %19 = vector.load %arg7[%c0_13, %c127] : memref<4x326xf32, #tpu.memory_space<vmem>>, vector<4x16xf32>
    tpu.vector_store %arg7[%c0_13, %c127], %18 {strides = array<i32>} : memref<4x326xf32, #tpu.memory_space<vmem>>, vector<4x16xf32>,
    %20 = vector.extract_strided_slice %5 {offsets = [0, 112], sizes = [4, 16], strides = [1, 1]} : vector<4x256xf32> to vector<4x16xf32>
    %c0_14 = arith.constant 0 : index
    %c145 = arith.constant 145 : index
    %21 = vector.load %arg7[%c0_14, %c145] : memref<4x326xf32, #tpu.memory_space<vmem>>, vector<4x16xf32>
    tpu.vector_store %arg7[%c0_14, %c145], %20 {strides = array<i32>} : memref<4x326xf32, #tpu.memory_space<vmem>>, vector<4x16xf32>,
    %22 = vector.extract_strided_slice %5 {offsets = [0, 128], sizes = [4, 16], strides = [1, 1]} : vector<4x256xf32> to vector<4x16xf32>
    %c0_15 = arith.constant 0 : index
    %c163 = arith.constant 163 : index
    %23 = vector.load %arg7[%c0_15, %c163] : memref<4x326xf32, #tpu.memory_space<vmem>>, vector<4x16xf32>
    tpu.vector_store %arg7[%c0_15, %c163], %22 {strides = array<i32>} : memref<4x326xf32, #tpu.memory_space<vmem>>, vector<4x16xf32>,
    %24 = vector.extract_strided_slice %5 {offsets = [0, 144], sizes = [4, 16], strides = [1, 1]} : vector<4x256xf32> to vector<4x16xf32>
    %c0_16 = arith.constant 0 : index
    %c181 = arith.constant 181 : index
    %25 = vector.load %arg7[%c0_16, %c181] : memref<4x326xf32, #tpu.memory_space<vmem>>, vector<4x16xf32>
    tpu.vector_store %arg7[%c0_16, %c181], %24 {strides = array<i32>} : memref<4x326xf32, #tpu.memory_space<vmem>>, vector<4x16xf32>,
    %26 = vector.extract_strided_slice %5 {offsets = [0, 160], sizes = [4, 16], strides = [1, 1]} : vector<4x256xf32> to vector<4x16xf32>
    %c0_17 = arith.constant 0 : index
    %c199 = arith.constant 199 : index
    %27 = vector.load %arg7[%c0_17, %c199] : memref<4x326xf32, #tpu.memory_space<vmem>>, vector<4x16xf32>
    tpu.vector_store %arg7[%c0_17, %c199], %26 {strides = array<i32>} : memref<4x326xf32, #tpu.memory_space<vmem>>, vector<4x16xf32>,
    %28 = vector.extract_strided_slice %5 {offsets = [0, 176], sizes = [4, 16], strides = [1, 1]} : vector<4x256xf32> to vector<4x16xf32>
    %c0_18 = arith.constant 0 : index
    %c217 = arith.constant 217 : index
    %29 = vector.load %arg7[%c0_18, %c217] : memref<4x326xf32, #tpu.memory_space<vmem>>, vector<4x16xf32>
    tpu.vector_store %arg7[%c0_18, %c217], %28 {strides = array<i32>} : memref<4x326xf32, #tpu.memory_space<vmem>>, vector<4x16xf32>,
    %30 = vector.extract_strided_slice %5 {offsets = [0, 192], sizes = [4, 16], strides = [1, 1]} : vector<4x256xf32> to vector<4x16xf32>
    %c0_19 = arith.constant 0 : index
    %c235 = arith.constant 235 : index
    %31 = vector.load %arg7[%c0_19, %c235] : memref<4x326xf32, #tpu.memory_space<vmem>>, vector<4x16xf32>
    tpu.vector_store %arg7[%c0_19, %c235], %30 {strides = array<i32>} : memref<4x326xf32, #tpu.memory_space<vmem>>, vector<4x16xf32>,
    %32 = vector.extract_strided_slice %5 {offsets = [0, 208], sizes = [4, 16], strides = [1, 1]} : vector<4x256xf32> to vector<4x16xf32>
    %c0_20 = arith.constant 0 : index
    %c253 = arith.constant 253 : index
    %33 = vector.load %arg7[%c0_20, %c253] : memref<4x326xf32, #tpu.memory_space<vmem>>, vector<4x16xf32>
    tpu.vector_store %arg7[%c0_20, %c253], %32 {strides = array<i32>} : memref<4x326xf32, #tpu.memory_space<vmem>>, vector<4x16xf32>,
    %34 = vector.extract_strided_slice %5 {offsets = [0, 224], sizes = [4, 16], strides = [1, 1]} : vector<4x256xf32> to vector<4x16xf32>
    %c0_21 = arith.constant 0 : index
    %c271 = arith.constant 271 : index
    %35 = vector.load %arg7[%c0_21, %c271] : memref<4x326xf32, #tpu.memory_space<vmem>>, vector<4x16xf32>
    tpu.vector_store %arg7[%c0_21, %c271], %34 {strides = array<i32>} : memref<4x326xf32, #tpu.memory_space<vmem>>, vector<4x16xf32>,
    %36 = vector.extract_strided_slice %5 {offsets = [0, 240], sizes = [4, 16], strides = [1, 1]} : vector<4x256xf32> to vector<4x16xf32>
    %c0_22 = arith.constant 0 : index
    %c289 = arith.constant 289 : index
    %37 = vector.load %arg7[%c0_22, %c289] : memref<4x326xf32, #tpu.memory_space<vmem>>, vector<4x16xf32>
    tpu.vector_store %arg7[%c0_22, %c289], %36 {strides = array<i32>} : memref<4x326xf32, #tpu.memory_space<vmem>>, vector<4x16xf32>,
    %c0_23 = arith.constant 0 : index
    %c0_24 = arith.constant 0 : index
    %38 = vector.load %arg7[%c0_23, %c0_24] : memref<4x326xf32, #tpu.memory_space<vmem>>, vector<4x288xf32>
    %c0_25 = arith.constant 0 : index
    %c0_26 = arith.constant 0 : index
    %39 = vector.load %arg9[%c0_25, %c0_26] : memref<36x288xf32, #tpu.memory_space<vmem>>, vector<4x288xf32>
    tpu.vector_store %arg9[%c0_25, %c0_26], %38 {strides = array<i32>} : memref<36x288xf32, #tpu.memory_space<vmem>>, vector<4x288xf32>,
    %c0_27 = arith.constant 0 : index
    %c1 = arith.constant 1 : index
    %40 = vector.load %arg7[%c0_27, %c1] : memref<4x326xf32, #tpu.memory_space<vmem>>, vector<4x288xf32>
    %c4 = arith.constant 4 : index
    %c0_28 = arith.constant 0 : index
    %41 = vector.load %arg9[%c4, %c0_28] : memref<36x288xf32, #tpu.memory_space<vmem>>, vector<4x288xf32>
    tpu.vector_store %arg9[%c4, %c0_28], %40 {strides = array<i32>} : memref<36x288xf32, #tpu.memory_space<vmem>>, vector<4x288xf32>,
    %c0_29 = arith.constant 0 : index
    %c2 = arith.constant 2 : index
    %42 = vector.load %arg7[%c0_29, %c2] : memref<4x326xf32, #tpu.memory_space<vmem>>, vector<4x288xf32>
    %c8 = arith.constant 8 : index
    %c0_30 = arith.constant 0 : index
    %43 = vector.load %arg9[%c8, %c0_30] : memref<36x288xf32, #tpu.memory_space<vmem>>, vector<4x288xf32>
    tpu.vector_store %arg9[%c8, %c0_30], %42 {strides = array<i32>} : memref<36x288xf32, #tpu.memory_space<vmem>>, vector<4x288xf32>,
    %c0_31 = arith.constant 0 : index
    %c18 = arith.constant 18 : index
    %44 = vector.load %arg7[%c0_31, %c18] : memref<4x326xf32, #tpu.memory_space<vmem>>, vector<4x288xf32>
    %c12 = arith.constant 12 : index
    %c0_32 = arith.constant 0 : index
    %45 = vector.load %arg9[%c12, %c0_32] : memref<36x288xf32, #tpu.memory_space<vmem>>, vector<4x288xf32>
    tpu.vector_store %arg9[%c12, %c0_32], %44 {strides = array<i32>} : memref<36x288xf32, #tpu.memory_space<vmem>>, vector<4x288xf32>,
    %c0_33 = arith.constant 0 : index
    %c19_34 = arith.constant 19 : index
    %46 = vector.load %arg7[%c0_33, %c19_34] : memref<4x326xf32, #tpu.memory_space<vmem>>, vector<4x288xf32>
    %c16 = arith.constant 16 : index
    %c0_35 = arith.constant 0 : index
    %47 = vector.load %arg9[%c16, %c0_35] : memref<36x288xf32, #tpu.memory_space<vmem>>, vector<4x288xf32>
    tpu.vector_store %arg9[%c16, %c0_35], %46 {strides = array<i32>} : memref<36x288xf32, #tpu.memory_space<vmem>>, vector<4x288xf32>,
    %c0_36 = arith.constant 0 : index
    %c20 = arith.constant 20 : index
    %48 = vector.load %arg7[%c0_36, %c20] : memref<4x326xf32, #tpu.memory_space<vmem>>, vector<4x288xf32>
    %c20_37 = arith.constant 20 : index
    %c0_38 = arith.constant 0 : index
    %49 = vector.load %arg9[%c20_37, %c0_38] : memref<36x288xf32, #tpu.memory_space<vmem>>, vector<4x288xf32>
    tpu.vector_store %arg9[%c20_37, %c0_38], %48 {strides = array<i32>} : memref<36x288xf32, #tpu.memory_space<vmem>>, vector<4x288xf32>,
    %c0_39 = arith.constant 0 : index
    %c36 = arith.constant 36 : index
    %50 = vector.load %arg7[%c0_39, %c36] : memref<4x326xf32, #tpu.memory_space<vmem>>, vector<4x288xf32>
    %c24 = arith.constant 24 : index
    %c0_40 = arith.constant 0 : index
    %51 = vector.load %arg9[%c24, %c0_40] : memref<36x288xf32, #tpu.memory_space<vmem>>, vector<4x288xf32>
    tpu.vector_store %arg9[%c24, %c0_40], %50 {strides = array<i32>} : memref<36x288xf32, #tpu.memory_space<vmem>>, vector<4x288xf32>,
    %c0_41 = arith.constant 0 : index
    %c37_42 = arith.constant 37 : index
    %52 = vector.load %arg7[%c0_41, %c37_42] : memref<4x326xf32, #tpu.memory_space<vmem>>, vector<4x288xf32>
    %c28 = arith.constant 28 : index
    %c0_43 = arith.constant 0 : index
    %53 = vector.load %arg9[%c28, %c0_43] : memref<36x288xf32, #tpu.memory_space<vmem>>, vector<4x288xf32>
    tpu.vector_store %arg9[%c28, %c0_43], %52 {strides = array<i32>} : memref<36x288xf32, #tpu.memory_space<vmem>>, vector<4x288xf32>,
    %c0_44 = arith.constant 0 : index
    %c38 = arith.constant 38 : index
    %54 = vector.load %arg7[%c0_44, %c38] : memref<4x326xf32, #tpu.memory_space<vmem>>, vector<4x288xf32>
    %c32 = arith.constant 32 : index
    %c0_45 = arith.constant 0 : index
    %55 = vector.load %arg9[%c32, %c0_45] : memref<36x288xf32, #tpu.memory_space<vmem>>, vector<4x288xf32>
    tpu.vector_store %arg9[%c32, %c0_45], %54 {strides = array<i32>} : memref<36x288xf32, #tpu.memory_space<vmem>>, vector<4x288xf32>,
    %c0_46 = arith.constant 0 : index
    %c0_47 = arith.constant 0 : index
    %56 = vector.load %arg2[%c0_46, %c0_47] : memref<8x36xf32, #tpu.memory_space<vmem>>, vector<8x36xf32>
    %c0_48 = arith.constant 0 : index
    %c0_49 = arith.constant 0 : index
    %57 = vector.load %arg9[%c0_48, %c0_49] : memref<36x288xf32, #tpu.memory_space<vmem>>, vector<36x288xf32>
    %cst_50 = arith.constant dense<0.000000e+00> : vector<8x288xf32>
    %58 = tpu.matmul %56, %57, %cst_50 {dimension_numbers = #tpu.dot_dimension_numbers<[1], [0], [0], [1], [0, 0, 1, 1], [], []>} : vector<8x36xf32>, vector<36x288xf32>, vector<8x288xf32> -> vector<8x288xf32>
    %c0_51 = arith.constant 0 : index
    %c0_52 = arith.constant 0 : index
    %59 = vector.load %arg3[%c0_51, %c0_52] : memref<8x1xf32, #tpu.memory_space<vmem>>, vector<8x1xf32>
    %60 = vector.broadcast %59 : vector<8x1xf32> to vector<8x288xf32>
    %61 = arith.addf %58, %60 : vector<8x288xf32>
    %cst_53 = arith.constant 0.000000e+00 : f32
    %62 = vector.broadcast %cst_53 : f32 to vector<8x288xf32>
    %63 = arith.maximumf %61, %62 : vector<8x288xf32>
    %64 = vector.extract_strided_slice %63 {offsets = [0, 0], sizes = [8, 16], strides = [1, 1]} : vector<8x288xf32> to vector<8x16xf32>
    %c0_54 = arith.constant 0 : index
    %c19_55 = arith.constant 19 : index
    %65 = vector.load %arg8[%c0_54, %c19_55] : memref<8x326xf32, #tpu.memory_space<vmem>>, vector<8x16xf32>
    tpu.vector_store %arg8[%c0_54, %c19_55], %64 {strides = array<i32>} : memref<8x326xf32, #tpu.memory_space<vmem>>, vector<8x16xf32>,
    %66 = vector.extract_strided_slice %63 {offsets = [0, 18], sizes = [8, 16], strides = [1, 1]} : vector<8x288xf32> to vector<8x16xf32>
    %c0_56 = arith.constant 0 : index
    %c37_57 = arith.constant 37 : index
    %67 = vector.load %arg8[%c0_56, %c37_57] : memref<8x326xf32, #tpu.memory_space<vmem>>, vector<8x16xf32>
    tpu.vector_store %arg8[%c0_56, %c37_57], %66 {strides = array<i32>} : memref<8x326xf32, #tpu.memory_space<vmem>>, vector<8x16xf32>,
    %68 = vector.extract_strided_slice %63 {offsets = [0, 36], sizes = [8, 16], strides = [1, 1]} : vector<8x288xf32> to vector<8x16xf32>
    %c0_58 = arith.constant 0 : index
    %c55_59 = arith.constant 55 : index
    %69 = vector.load %arg8[%c0_58, %c55_59] : memref<8x326xf32, #tpu.memory_space<vmem>>, vector<8x16xf32>
    tpu.vector_store %arg8[%c0_58, %c55_59], %68 {strides = array<i32>} : memref<8x326xf32, #tpu.memory_space<vmem>>, vector<8x16xf32>,
    %70 = vector.extract_strided_slice %63 {offsets = [0, 54], sizes = [8, 16], strides = [1, 1]} : vector<8x288xf32> to vector<8x16xf32>
    %c0_60 = arith.constant 0 : index
    %c73_61 = arith.constant 73 : index
    %71 = vector.load %arg8[%c0_60, %c73_61] : memref<8x326xf32, #tpu.memory_space<vmem>>, vector<8x16xf32>
    tpu.vector_store %arg8[%c0_60, %c73_61], %70 {strides = array<i32>} : memref<8x326xf32, #tpu.memory_space<vmem>>, vector<8x16xf32>,
    %72 = vector.extract_strided_slice %63 {offsets = [0, 72], sizes = [8, 16], strides = [1, 1]} : vector<8x288xf32> to vector<8x16xf32>
    %c0_62 = arith.constant 0 : index
    %c91_63 = arith.constant 91 : index
    %73 = vector.load %arg8[%c0_62, %c91_63] : memref<8x326xf32, #tpu.memory_space<vmem>>, vector<8x16xf32>
    tpu.vector_store %arg8[%c0_62, %c91_63], %72 {strides = array<i32>} : memref<8x326xf32, #tpu.memory_space<vmem>>, vector<8x16xf32>,
    %74 = vector.extract_strided_slice %63 {offsets = [0, 90], sizes = [8, 16], strides = [1, 1]} : vector<8x288xf32> to vector<8x16xf32>
    %c0_64 = arith.constant 0 : index
    %c109_65 = arith.constant 109 : index
    %75 = vector.load %arg8[%c0_64, %c109_65] : memref<8x326xf32, #tpu.memory_space<vmem>>, vector<8x16xf32>
    tpu.vector_store %arg8[%c0_64, %c109_65], %74 {strides = array<i32>} : memref<8x326xf32, #tpu.memory_space<vmem>>, vector<8x16xf32>,
    %76 = vector.extract_strided_slice %63 {offsets = [0, 108], sizes = [8, 16], strides = [1, 1]} : vector<8x288xf32> to vector<8x16xf32>
    %c0_66 = arith.constant 0 : index
    %c127_67 = arith.constant 127 : index
    %77 = vector.load %arg8[%c0_66, %c127_67] : memref<8x326xf32, #tpu.memory_space<vmem>>, vector<8x16xf32>
    tpu.vector_store %arg8[%c0_66, %c127_67], %76 {strides = array<i32>} : memref<8x326xf32, #tpu.memory_space<vmem>>, vector<8x16xf32>,
    %78 = vector.extract_strided_slice %63 {offsets = [0, 126], sizes = [8, 16], strides = [1, 1]} : vector<8x288xf32> to vector<8x16xf32>
    %c0_68 = arith.constant 0 : index
    %c145_69 = arith.constant 145 : index
    %79 = vector.load %arg8[%c0_68, %c145_69] : memref<8x326xf32, #tpu.memory_space<vmem>>, vector<8x16xf32>
    tpu.vector_store %arg8[%c0_68, %c145_69], %78 {strides = array<i32>} : memref<8x326xf32, #tpu.memory_space<vmem>>, vector<8x16xf32>,
    %80 = vector.extract_strided_slice %63 {offsets = [0, 144], sizes = [8, 16], strides = [1, 1]} : vector<8x288xf32> to vector<8x16xf32>
    %c0_70 = arith.constant 0 : index
    %c163_71 = arith.constant 163 : index
    %81 = vector.load %arg8[%c0_70, %c163_71] : memref<8x326xf32, #tpu.memory_space<vmem>>, vector<8x16xf32>
    tpu.vector_store %arg8[%c0_70, %c163_71], %80 {strides = array<i32>} : memref<8x326xf32, #tpu.memory_space<vmem>>, vector<8x16xf32>,
    %82 = vector.extract_strided_slice %63 {offsets = [0, 162], sizes = [8, 16], strides = [1, 1]} : vector<8x288xf32> to vector<8x16xf32>
    %c0_72 = arith.constant 0 : index
    %c181_73 = arith.constant 181 : index
    %83 = vector.load %arg8[%c0_72, %c181_73] : memref<8x326xf32, #tpu.memory_space<vmem>>, vector<8x16xf32>
    tpu.vector_store %arg8[%c0_72, %c181_73], %82 {strides = array<i32>} : memref<8x326xf32, #tpu.memory_space<vmem>>, vector<8x16xf32>,
    %84 = vector.extract_strided_slice %63 {offsets = [0, 180], sizes = [8, 16], strides = [1, 1]} : vector<8x288xf32> to vector<8x16xf32>
    %c0_74 = arith.constant 0 : index
    %c199_75 = arith.constant 199 : index
    %85 = vector.load %arg8[%c0_74, %c199_75] : memref<8x326xf32, #tpu.memory_space<vmem>>, vector<8x16xf32>
    tpu.vector_store %arg8[%c0_74, %c199_75], %84 {strides = array<i32>} : memref<8x326xf32, #tpu.memory_space<vmem>>, vector<8x16xf32>,
    %86 = vector.extract_strided_slice %63 {offsets = [0, 198], sizes = [8, 16], strides = [1, 1]} : vector<8x288xf32> to vector<8x16xf32>
    %c0_76 = arith.constant 0 : index
    %c217_77 = arith.constant 217 : index
    %87 = vector.load %arg8[%c0_76, %c217_77] : memref<8x326xf32, #tpu.memory_space<vmem>>, vector<8x16xf32>
    tpu.vector_store %arg8[%c0_76, %c217_77], %86 {strides = array<i32>} : memref<8x326xf32, #tpu.memory_space<vmem>>, vector<8x16xf32>,
    %88 = vector.extract_strided_slice %63 {offsets = [0, 216], sizes = [8, 16], strides = [1, 1]} : vector<8x288xf32> to vector<8x16xf32>
    %c0_78 = arith.constant 0 : index
    %c235_79 = arith.constant 235 : index
    %89 = vector.load %arg8[%c0_78, %c235_79] : memref<8x326xf32, #tpu.memory_space<vmem>>, vector<8x16xf32>
    tpu.vector_store %arg8[%c0_78, %c235_79], %88 {strides = array<i32>} : memref<8x326xf32, #tpu.memory_space<vmem>>, vector<8x16xf32>,
    %90 = vector.extract_strided_slice %63 {offsets = [0, 234], sizes = [8, 16], strides = [1, 1]} : vector<8x288xf32> to vector<8x16xf32>
    %c0_80 = arith.constant 0 : index
    %c253_81 = arith.constant 253 : index
    %91 = vector.load %arg8[%c0_80, %c253_81] : memref<8x326xf32, #tpu.memory_space<vmem>>, vector<8x16xf32>
    tpu.vector_store %arg8[%c0_80, %c253_81], %90 {strides = array<i32>} : memref<8x326xf32, #tpu.memory_space<vmem>>, vector<8x16xf32>,
    %92 = vector.extract_strided_slice %63 {offsets = [0, 252], sizes = [8, 16], strides = [1, 1]} : vector<8x288xf32> to vector<8x16xf32>
    %c0_82 = arith.constant 0 : index
    %c271_83 = arith.constant 271 : index
    %93 = vector.load %arg8[%c0_82, %c271_83] : memref<8x326xf32, #tpu.memory_space<vmem>>, vector<8x16xf32>
    tpu.vector_store %arg8[%c0_82, %c271_83], %92 {strides = array<i32>} : memref<8x326xf32, #tpu.memory_space<vmem>>, vector<8x16xf32>,
    %94 = vector.extract_strided_slice %63 {offsets = [0, 270], sizes = [8, 16], strides = [1, 1]} : vector<8x288xf32> to vector<8x16xf32>
    %c0_84 = arith.constant 0 : index
    %c289_85 = arith.constant 289 : index
    %95 = vector.load %arg8[%c0_84, %c289_85] : memref<8x326xf32, #tpu.memory_space<vmem>>, vector<8x16xf32>
    tpu.vector_store %arg8[%c0_84, %c289_85], %94 {strides = array<i32>} : memref<8x326xf32, #tpu.memory_space<vmem>>, vector<8x16xf32>,
    %c0_86 = arith.constant 0 : index
    %c0_87 = arith.constant 0 : index
    %96 = vector.load %arg8[%c0_86, %c0_87] : memref<8x326xf32, #tpu.memory_space<vmem>>, vector<8x288xf32>
    %c0_88 = arith.constant 0 : index
    %c0_89 = arith.constant 0 : index
    %97 = vector.load %arg10[%c0_88, %c0_89] : memref<72x288xf32, #tpu.memory_space<vmem>>, vector<8x288xf32>
    tpu.vector_store %arg10[%c0_88, %c0_89], %96 {strides = array<i32>} : memref<72x288xf32, #tpu.memory_space<vmem>>, vector<8x288xf32>,
    %c0_90 = arith.constant 0 : index
    %c1_91 = arith.constant 1 : index
    %98 = vector.load %arg8[%c0_90, %c1_91] : memref<8x326xf32, #tpu.memory_space<vmem>>, vector<8x288xf32>
    %c8_92 = arith.constant 8 : index
    %c0_93 = arith.constant 0 : index
    %99 = vector.load %arg10[%c8_92, %c0_93] : memref<72x288xf32, #tpu.memory_space<vmem>>, vector<8x288xf32>
    tpu.vector_store %arg10[%c8_92, %c0_93], %98 {strides = array<i32>} : memref<72x288xf32, #tpu.memory_space<vmem>>, vector<8x288xf32>,
    %c0_94 = arith.constant 0 : index
    %c2_95 = arith.constant 2 : index
    %100 = vector.load %arg8[%c0_94, %c2_95] : memref<8x326xf32, #tpu.memory_space<vmem>>, vector<8x288xf32>
    %c16_96 = arith.constant 16 : index
    %c0_97 = arith.constant 0 : index
    %101 = vector.load %arg10[%c16_96, %c0_97] : memref<72x288xf32, #tpu.memory_space<vmem>>, vector<8x288xf32>
    tpu.vector_store %arg10[%c16_96, %c0_97], %100 {strides = array<i32>} : memref<72x288xf32, #tpu.memory_space<vmem>>, vector<8x288xf32>,
    %c0_98 = arith.constant 0 : index
    %c18_99 = arith.constant 18 : index
    %102 = vector.load %arg8[%c0_98, %c18_99] : memref<8x326xf32, #tpu.memory_space<vmem>>, vector<8x288xf32>
    %c24_100 = arith.constant 24 : index
    %c0_101 = arith.constant 0 : index
    %103 = vector.load %arg10[%c24_100, %c0_101] : memref<72x288xf32, #tpu.memory_space<vmem>>, vector<8x288xf32>
    tpu.vector_store %arg10[%c24_100, %c0_101], %102 {strides = array<i32>} : memref<72x288xf32, #tpu.memory_space<vmem>>, vector<8x288xf32>,
    %c0_102 = arith.constant 0 : index
    %c19_103 = arith.constant 19 : index
    %104 = vector.load %arg8[%c0_102, %c19_103] : memref<8x326xf32, #tpu.memory_space<vmem>>, vector<8x288xf32>
    %c32_104 = arith.constant 32 : index
    %c0_105 = arith.constant 0 : index
    %105 = vector.load %arg10[%c32_104, %c0_105] : memref<72x288xf32, #tpu.memory_space<vmem>>, vector<8x288xf32>
    tpu.vector_store %arg10[%c32_104, %c0_105], %104 {strides = array<i32>} : memref<72x288xf32, #tpu.memory_space<vmem>>, vector<8x288xf32>,
    %c0_106 = arith.constant 0 : index
    %c20_107 = arith.constant 20 : index
    %106 = vector.load %arg8[%c0_106, %c20_107] : memref<8x326xf32, #tpu.memory_space<vmem>>, vector<8x288xf32>
    %c40 = arith.constant 40 : index
    %c0_108 = arith.constant 0 : index
    %107 = vector.load %arg10[%c40, %c0_108] : memref<72x288xf32, #tpu.memory_space<vmem>>, vector<8x288xf32>
    tpu.vector_store %arg10[%c40, %c0_108], %106 {strides = array<i32>} : memref<72x288xf32, #tpu.memory_space<vmem>>, vector<8x288xf32>,
    %c0_109 = arith.constant 0 : index
    %c36_110 = arith.constant 36 : index
    %108 = vector.load %arg8[%c0_109, %c36_110] : memref<8x326xf32, #tpu.memory_space<vmem>>, vector<8x288xf32>
    %c48 = arith.constant 48 : index
    %c0_111 = arith.constant 0 : index
    %109 = vector.load %arg10[%c48, %c0_111] : memref<72x288xf32, #tpu.memory_space<vmem>>, vector<8x288xf32>
    tpu.vector_store %arg10[%c48, %c0_111], %108 {strides = array<i32>} : memref<72x288xf32, #tpu.memory_space<vmem>>, vector<8x288xf32>,
    %c0_112 = arith.constant 0 : index
    %c37_113 = arith.constant 37 : index
    %110 = vector.load %arg8[%c0_112, %c37_113] : memref<8x326xf32, #tpu.memory_space<vmem>>, vector<8x288xf32>
    %c56 = arith.constant 56 : index
    %c0_114 = arith.constant 0 : index
    %111 = vector.load %arg10[%c56, %c0_114] : memref<72x288xf32, #tpu.memory_space<vmem>>, vector<8x288xf32>
    tpu.vector_store %arg10[%c56, %c0_114], %110 {strides = array<i32>} : memref<72x288xf32, #tpu.memory_space<vmem>>, vector<8x288xf32>,
    %c0_115 = arith.constant 0 : index
    %c38_116 = arith.constant 38 : index
    %112 = vector.load %arg8[%c0_115, %c38_116] : memref<8x326xf32, #tpu.memory_space<vmem>>, vector<8x288xf32>
    %c64 = arith.constant 64 : index
    %c0_117 = arith.constant 0 : index
    %113 = vector.load %arg10[%c64, %c0_117] : memref<72x288xf32, #tpu.memory_space<vmem>>, vector<8x288xf32>
    tpu.vector_store %arg10[%c64, %c0_117], %112 {strides = array<i32>} : memref<72x288xf32, #tpu.memory_space<vmem>>, vector<8x288xf32>,
    %c0_118 = arith.constant 0 : index
    %c0_119 = arith.constant 0 : index
    %114 = vector.load %arg4[%c0_118, %c0_119] : memref<8x72xf32, #tpu.memory_space<vmem>>, vector<8x72xf32>
    %c0_120 = arith.constant 0 : index
    %c0_121 = arith.constant 0 : index
    %115 = vector.load %arg10[%c0_120, %c0_121] : memref<72x288xf32, #tpu.memory_space<vmem>>, vector<72x288xf32>
    %cst_122 = arith.constant dense<0.000000e+00> : vector<8x288xf32>
    %116 = tpu.matmul %114, %115, %cst_122 {dimension_numbers = #tpu.dot_dimension_numbers<[1], [0], [0], [1], [0, 0, 1, 1], [], []>} : vector<8x72xf32>, vector<72x288xf32>, vector<8x288xf32> -> vector<8x288xf32>
    %c0_123 = arith.constant 0 : index
    %c0_124 = arith.constant 0 : index
    %117 = vector.load %arg5[%c0_123, %c0_124] : memref<8x1xf32, #tpu.memory_space<vmem>>, vector<8x1xf32>
    %118 = vector.broadcast %117 : vector<8x1xf32> to vector<8x288xf32>
    %119 = arith.addf %116, %118 : vector<8x288xf32>
    %cst_125 = arith.constant 0.000000e+00 : f32
    %120 = vector.broadcast %cst_125 : f32 to vector<8x288xf32>
    %121 = arith.maximumf %119, %120 : vector<8x288xf32>
    %122 = vector.extract_strided_slice %121 {offsets = [0, 0], sizes = [8, 16], strides = [1, 1]} : vector<8x288xf32> to vector<8x16xf32>
    %c0_126 = arith.constant 0 : index
    %c0_127 = arith.constant 0 : index
    %c0_128 = arith.constant 0 : index
    %123 = vector.load %arg6[%c0_126, %c0_127, %c0_128] : memref<1x8x256xf32, #tpu.memory_space<vmem>>, vector<1x8x16xf32>
    %124 = vector.shape_cast %123 : vector<1x8x16xf32> to vector<8x16xf32>
    %125 = vector.shape_cast %122 : vector<8x16xf32> to vector<1x8x16xf32>
    tpu.vector_store %arg6[%c0_126, %c0_127, %c0_128], %125 {strides = array<i32>} : memref<1x8x256xf32, #tpu.memory_space<vmem>>, vector<1x8x16xf32>,
    %126 = vector.extract_strided_slice %121 {offsets = [0, 18], sizes = [8, 16], strides = [1, 1]} : vector<8x288xf32> to vector<8x16xf32>
    %c0_129 = arith.constant 0 : index
    %c0_130 = arith.constant 0 : index
    %c16_131 = arith.constant 16 : index
    %127 = vector.load %arg6[%c0_129, %c0_130, %c16_131] : memref<1x8x256xf32, #tpu.memory_space<vmem>>, vector<1x8x16xf32>
    %128 = vector.shape_cast %127 : vector<1x8x16xf32> to vector<8x16xf32>
    %129 = vector.shape_cast %126 : vector<8x16xf32> to vector<1x8x16xf32>
    tpu.vector_store %arg6[%c0_129, %c0_130, %c16_131], %129 {strides = array<i32>} : memref<1x8x256xf32, #tpu.memory_space<vmem>>, vector<1x8x16xf32>,
    %130 = vector.extract_strided_slice %121 {offsets = [0, 36], sizes = [8, 16], strides = [1, 1]} : vector<8x288xf32> to vector<8x16xf32>
    %c0_132 = arith.constant 0 : index
    %c0_133 = arith.constant 0 : index
    %c32_134 = arith.constant 32 : index
    %131 = vector.load %arg6[%c0_132, %c0_133, %c32_134] : memref<1x8x256xf32, #tpu.memory_space<vmem>>, vector<1x8x16xf32>
    %132 = vector.shape_cast %131 : vector<1x8x16xf32> to vector<8x16xf32>
    %133 = vector.shape_cast %130 : vector<8x16xf32> to vector<1x8x16xf32>
    tpu.vector_store %arg6[%c0_132, %c0_133, %c32_134], %133 {strides = array<i32>} : memref<1x8x256xf32, #tpu.memory_space<vmem>>, vector<1x8x16xf32>,
    %134 = vector.extract_strided_slice %121 {offsets = [0, 54], sizes = [8, 16], strides = [1, 1]} : vector<8x288xf32> to vector<8x16xf32>
    %c0_135 = arith.constant 0 : index
    %c0_136 = arith.constant 0 : index
    %c48_137 = arith.constant 48 : index
    %135 = vector.load %arg6[%c0_135, %c0_136, %c48_137] : memref<1x8x256xf32, #tpu.memory_space<vmem>>, vector<1x8x16xf32>
    %136 = vector.shape_cast %135 : vector<1x8x16xf32> to vector<8x16xf32>
    %137 = vector.shape_cast %134 : vector<8x16xf32> to vector<1x8x16xf32>
    tpu.vector_store %arg6[%c0_135, %c0_136, %c48_137], %137 {strides = array<i32>} : memref<1x8x256xf32, #tpu.memory_space<vmem>>, vector<1x8x16xf32>,
    %138 = vector.extract_strided_slice %121 {offsets = [0, 72], sizes = [8, 16], strides = [1, 1]} : vector<8x288xf32> to vector<8x16xf32>
    %c0_138 = arith.constant 0 : index
    %c0_139 = arith.constant 0 : index
    %c64_140 = arith.constant 64 : index
    %139 = vector.load %arg6[%c0_138, %c0_139, %c64_140] : memref<1x8x256xf32, #tpu.memory_space<vmem>>, vector<1x8x16xf32>
    %140 = vector.shape_cast %139 : vector<1x8x16xf32> to vector<8x16xf32>
    %141 = vector.shape_cast %138 : vector<8x16xf32> to vector<1x8x16xf32>
    tpu.vector_store %arg6[%c0_138, %c0_139, %c64_140], %141 {strides = array<i32>} : memref<1x8x256xf32, #tpu.memory_space<vmem>>, vector<1x8x16xf32>,
    %142 = vector.extract_strided_slice %121 {offsets = [0, 90], sizes = [8, 16], strides = [1, 1]} : vector<8x288xf32> to vector<8x16xf32>
    %c0_141 = arith.constant 0 : index
    %c0_142 = arith.constant 0 : index
    %c80 = arith.constant 80 : index
    %143 = vector.load %arg6[%c0_141, %c0_142, %c80] : memref<1x8x256xf32, #tpu.memory_space<vmem>>, vector<1x8x16xf32>
    %144 = vector.shape_cast %143 : vector<1x8x16xf32> to vector<8x16xf32>
    %145 = vector.shape_cast %142 : vector<8x16xf32> to vector<1x8x16xf32>
    tpu.vector_store %arg6[%c0_141, %c0_142, %c80], %145 {strides = array<i32>} : memref<1x8x256xf32, #tpu.memory_space<vmem>>, vector<1x8x16xf32>,
    %146 = vector.extract_strided_slice %121 {offsets = [0, 108], sizes = [8, 16], strides = [1, 1]} : vector<8x288xf32> to vector<8x16xf32>
    %c0_143 = arith.constant 0 : index
    %c0_144 = arith.constant 0 : index
    %c96 = arith.constant 96 : index
    %147 = vector.load %arg6[%c0_143, %c0_144, %c96] : memref<1x8x256xf32, #tpu.memory_space<vmem>>, vector<1x8x16xf32>
    %148 = vector.shape_cast %147 : vector<1x8x16xf32> to vector<8x16xf32>
    %149 = vector.shape_cast %146 : vector<8x16xf32> to vector<1x8x16xf32>
    tpu.vector_store %arg6[%c0_143, %c0_144, %c96], %149 {strides = array<i32>} : memref<1x8x256xf32, #tpu.memory_space<vmem>>, vector<1x8x16xf32>,
    %150 = vector.extract_strided_slice %121 {offsets = [0, 126], sizes = [8, 16], strides = [1, 1]} : vector<8x288xf32> to vector<8x16xf32>
    %c0_145 = arith.constant 0 : index
    %c0_146 = arith.constant 0 : index
    %c112 = arith.constant 112 : index
    %151 = vector.load %arg6[%c0_145, %c0_146, %c112] : memref<1x8x256xf32, #tpu.memory_space<vmem>>, vector<1x8x16xf32>
    %152 = vector.shape_cast %151 : vector<1x8x16xf32> to vector<8x16xf32>
    %153 = vector.shape_cast %150 : vector<8x16xf32> to vector<1x8x16xf32>
    tpu.vector_store %arg6[%c0_145, %c0_146, %c112], %153 {strides = array<i32>} : memref<1x8x256xf32, #tpu.memory_space<vmem>>, vector<1x8x16xf32>,
    %154 = vector.extract_strided_slice %121 {offsets = [0, 144], sizes = [8, 16], strides = [1, 1]} : vector<8x288xf32> to vector<8x16xf32>
    %c0_147 = arith.constant 0 : index
    %c0_148 = arith.constant 0 : index
    %c128 = arith.constant 128 : index
    %155 = vector.load %arg6[%c0_147, %c0_148, %c128] : memref<1x8x256xf32, #tpu.memory_space<vmem>>, vector<1x8x16xf32>
    %156 = vector.shape_cast %155 : vector<1x8x16xf32> to vector<8x16xf32>
    %157 = vector.shape_cast %154 : vector<8x16xf32> to vector<1x8x16xf32>
    tpu.vector_store %arg6[%c0_147, %c0_148, %c128], %157 {strides = array<i32>} : memref<1x8x256xf32, #tpu.memory_space<vmem>>, vector<1x8x16xf32>,
    %158 = vector.extract_strided_slice %121 {offsets = [0, 162], sizes = [8, 16], strides = [1, 1]} : vector<8x288xf32> to vector<8x16xf32>
    %c0_149 = arith.constant 0 : index
    %c0_150 = arith.constant 0 : index
    %c144 = arith.constant 144 : index
    %159 = vector.load %arg6[%c0_149, %c0_150, %c144] : memref<1x8x256xf32, #tpu.memory_space<vmem>>, vector<1x8x16xf32>
    %160 = vector.shape_cast %159 : vector<1x8x16xf32> to vector<8x16xf32>
    %161 = vector.shape_cast %158 : vector<8x16xf32> to vector<1x8x16xf32>
    tpu.vector_store %arg6[%c0_149, %c0_150, %c144], %161 {strides = array<i32>} : memref<1x8x256xf32, #tpu.memory_space<vmem>>, vector<1x8x16xf32>,
    %162 = vector.extract_strided_slice %121 {offsets = [0, 180], sizes = [8, 16], strides = [1, 1]} : vector<8x288xf32> to vector<8x16xf32>
    %c0_151 = arith.constant 0 : index
    %c0_152 = arith.constant 0 : index
    %c160 = arith.constant 160 : index
    %163 = vector.load %arg6[%c0_151, %c0_152, %c160] : memref<1x8x256xf32, #tpu.memory_space<vmem>>, vector<1x8x16xf32>
    %164 = vector.shape_cast %163 : vector<1x8x16xf32> to vector<8x16xf32>
    %165 = vector.shape_cast %162 : vector<8x16xf32> to vector<1x8x16xf32>
    tpu.vector_store %arg6[%c0_151, %c0_152, %c160], %165 {strides = array<i32>} : memref<1x8x256xf32, #tpu.memory_space<vmem>>, vector<1x8x16xf32>,
    %166 = vector.extract_strided_slice %121 {offsets = [0, 198], sizes = [8, 16], strides = [1, 1]} : vector<8x288xf32> to vector<8x16xf32>
    %c0_153 = arith.constant 0 : index
    %c0_154 = arith.constant 0 : index
    %c176 = arith.constant 176 : index
    %167 = vector.load %arg6[%c0_153, %c0_154, %c176] : memref<1x8x256xf32, #tpu.memory_space<vmem>>, vector<1x8x16xf32>
    %168 = vector.shape_cast %167 : vector<1x8x16xf32> to vector<8x16xf32>
    %169 = vector.shape_cast %166 : vector<8x16xf32> to vector<1x8x16xf32>
    tpu.vector_store %arg6[%c0_153, %c0_154, %c176], %169 {strides = array<i32>} : memref<1x8x256xf32, #tpu.memory_space<vmem>>, vector<1x8x16xf32>,
    %170 = vector.extract_strided_slice %121 {offsets = [0, 216], sizes = [8, 16], strides = [1, 1]} : vector<8x288xf32> to vector<8x16xf32>
    %c0_155 = arith.constant 0 : index
    %c0_156 = arith.constant 0 : index
    %c192 = arith.constant 192 : index
    %171 = vector.load %arg6[%c0_155, %c0_156, %c192] : memref<1x8x256xf32, #tpu.memory_space<vmem>>, vector<1x8x16xf32>
    %172 = vector.shape_cast %171 : vector<1x8x16xf32> to vector<8x16xf32>
    %173 = vector.shape_cast %170 : vector<8x16xf32> to vector<1x8x16xf32>
    tpu.vector_store %arg6[%c0_155, %c0_156, %c192], %173 {strides = array<i32>} : memref<1x8x256xf32, #tpu.memory_space<vmem>>, vector<1x8x16xf32>,
    %174 = vector.extract_strided_slice %121 {offsets = [0, 234], sizes = [8, 16], strides = [1, 1]} : vector<8x288xf32> to vector<8x16xf32>
    %c0_157 = arith.constant 0 : index
    %c0_158 = arith.constant 0 : index
    %c208 = arith.constant 208 : index
    %175 = vector.load %arg6[%c0_157, %c0_158, %c208] : memref<1x8x256xf32, #tpu.memory_space<vmem>>, vector<1x8x16xf32>
    %176 = vector.shape_cast %175 : vector<1x8x16xf32> to vector<8x16xf32>
    %177 = vector.shape_cast %174 : vector<8x16xf32> to vector<1x8x16xf32>
    tpu.vector_store %arg6[%c0_157, %c0_158, %c208], %177 {strides = array<i32>} : memref<1x8x256xf32, #tpu.memory_space<vmem>>, vector<1x8x16xf32>,
    %178 = vector.extract_strided_slice %121 {offsets = [0, 252], sizes = [8, 16], strides = [1, 1]} : vector<8x288xf32> to vector<8x16xf32>
    %c0_159 = arith.constant 0 : index
    %c0_160 = arith.constant 0 : index
    %c224 = arith.constant 224 : index
    %179 = vector.load %arg6[%c0_159, %c0_160, %c224] : memref<1x8x256xf32, #tpu.memory_space<vmem>>, vector<1x8x16xf32>
    %180 = vector.shape_cast %179 : vector<1x8x16xf32> to vector<8x16xf32>
    %181 = vector.shape_cast %178 : vector<8x16xf32> to vector<1x8x16xf32>
    tpu.vector_store %arg6[%c0_159, %c0_160, %c224], %181 {strides = array<i32>} : memref<1x8x256xf32, #tpu.memory_space<vmem>>, vector<1x8x16xf32>,
    %182 = vector.extract_strided_slice %121 {offsets = [0, 270], sizes = [8, 16], strides = [1, 1]} : vector<8x288xf32> to vector<8x16xf32>
    %c0_161 = arith.constant 0 : index
    %c0_162 = arith.constant 0 : index
    %c240 = arith.constant 240 : index
    %183 = vector.load %arg6[%c0_161, %c0_162, %c240] : memref<1x8x256xf32, #tpu.memory_space<vmem>>, vector<1x8x16xf32>
    %184 = vector.shape_cast %183 : vector<1x8x16xf32> to vector<8x16xf32>
    %185 = vector.shape_cast %182 : vector<8x16xf32> to vector<1x8x16xf32>
    tpu.vector_store %arg6[%c0_161, %c0_162, %c240], %185 {strides = array<i32>} : memref<1x8x256xf32, #tpu.memory_space<vmem>>, vector<1x8x16xf32>,
    return
  }
  func.func @transform_0(%arg0: i32) -> (i32, i32, i32) {
    %c0_i32 = arith.constant 0 : i32
    %c0_i32_0 = arith.constant 0 : i32
    %c0_i32_1 = arith.constant 0 : i32
    return %arg0, %c0_i32, %c0_i32_0 : i32, i32, i32
  }
  func.func @transform_1(%arg0: i32) -> (i32, i32) {
    %c0_i32 = arith.constant 0 : i32
    %c0_i32_0 = arith.constant 0 : i32
    %c0_i32_1 = arith.constant 0 : i32
    return %c0_i32, %c0_i32_0 : i32, i32
  }
  func.func @transform_2(%arg0: i32) -> (i32, i32) {
    %c0_i32 = arith.constant 0 : i32
    %c0_i32_0 = arith.constant 0 : i32
    %c0_i32_1 = arith.constant 0 : i32
    return %c0_i32, %c0_i32_0 : i32, i32
  }
  func.func @transform_3(%arg0: i32) -> (i32, i32) {
    %c0_i32 = arith.constant 0 : i32
    %c0_i32_0 = arith.constant 0 : i32
    %c0_i32_1 = arith.constant 0 : i32
    return %c0_i32, %c0_i32_0 : i32, i32
  }
  func.func @transform_4(%arg0: i32) -> (i32, i32) {
    %c0_i32 = arith.constant 0 : i32
    %c0_i32_0 = arith.constant 0 : i32
    %c0_i32_1 = arith.constant 0 : i32
    return %c0_i32, %c0_i32_0 : i32, i32
  }
  func.func @transform_5(%arg0: i32) -> (i32, i32, i32) {
    %c0_i32 = arith.constant 0 : i32
    %c0_i32_0 = arith.constant 0 : i32
    %c0_i32_1 = arith.constant 0 : i32
    return %arg0, %c0_i32, %c0_i32_0 : i32, i32, i32
  }
}

</mosaic_0001>

<bundles_post_ra>
// kernel: tpu_custom_call.1
= control target key start
LH: loop header
LB: loop body
LE: loop exit
PB: predicated region body
PF: predicated region fallthrough
CT: control target
= control target key end

     0   :  { %10 = vsyncpa [#allocation7], 0  ;;  %s1834_s0 = inlined_call_operand.vmem [shape: f32[2,4,256], index: 0, kind: input, shape index: {}]   ;;  %s1835_s1 = inlined_call_operand.hbm [shape: f32[8,36], index: 1, kind: input, shape index: {}]   ;;  %s1836_s2 = inlined_call_operand.vmem [shape: f32[8,1], index: 2, kind: input, shape index: {}]   ;;  %s1837_s3 = inlined_call_operand.hbm [shape: f32[8,72], index: 3, kind: input, shape index: {}]   ;;  %s1838_s4 = inlined_call_operand.vmem [shape: f32[8,1], index: 4, kind: input, shape index: {}]   ;;  %s1839_s5 = inlined_call_operand.hbm [shape: f32[2,8,256], index: 5, kind: output, shape index: {}]  }
   0x1   :  { %11 = vsyncpa [#allocation10], 0 }
   0x2   :  { %12 = vsyncpa [#allocation8], 0 }
   0x3   :  { %14 = vsyncpa [#allocation8 + $0x1], 0  ;;  %s1519_s18 = smov 0   ;;  %s1521_s19 = smov 0  }
   0x4   :  { %s1523_s20 = smov 0   ;;  %s1525_s21 = smov 0  }
   0x5 LB: > { %s1540_s22 = sadd.s32 4294967295, %s1447_s21   ;;  %s1189_s23 = sadd.s32 4294967294, %s1447_s21   ;;  %s1447_s21 = sphi %s1525_s21, %s1855_s21   ;;  %s1443_s20 = sphi %s1523_s20, %s1854_s20   ;;  %s1439_s19 = sphi %s1521_s19, %s1853_s19   ;;  %s1435_s18 = sphi %s1519_s18, %s1852_s18  }
   0x6   : > { %s1544_s24 = sadd.s32 1, %s1447_s21   ;;  %s137_s25 = sadd.s32 1, %s1443_s20 }
   0x7   : > { %s134_s26 = ssub.s32 %s1447_s21, %s1544_s24  ;;  %p147_p0 = scmp.ne.s32.totalorder %s1443_s20, %s1439_s19 }
   0x8   : > { %p135_p1 = scmp.eq.s32.totalorder %s134_s26, 0  ;;  %p148_p2 = scmp.eq.s32.totalorder %s1540_s22, 1 }
   0x9   : > { %p153_p3 = scmp.ne.s32.totalorder %s1439_s19, %s1435_s18  ;;  %p154_p4 = scmp.eq.s32.totalorder %s1189_s23, 1 }
   0xa   : > { %s1555_s27 = scalar_select %p135_p1, %s1443_s20, %s137_s25  }
   0xb   : > { %p1557_p5 = por %p148_p2, %p147_p0  ;;  %p1561_p6 = por %p154_p4, %p153_p3 }
   0xc   : > { %p1190_p7 = scmp.ge.s32.totalorder %s1447_s21, 1  ;;  %p161_p8 = scmp.lt.s32.totalorder %s1447_s21, 3 }
   0xd   : > { %p1237_p9 = scmp.eq.s32.totalorder %s1540_s22, 0  ;;  %s173_s8 = sshll.u32 %s1835_s1, 4  ;;  %s174_s8 = int_to_ptr.hbm [resolvable:$true] %s173_s8 }
   0xe   : > { %p1568_p10 = pnand %p1190_p7, %p161_p8  ;;  %s1449_s9 = smov [#allocation6]  }
   0xf   : > { %s175_s10 = sshll.u32 %s1449_s9, 4  ;;  %s188_s13 = sshll.u32 %s1837_s3, 4  ;;  %s176_s10 = int_to_ptr.vmem [resolvable:$true] %s175_s10  ;;  %s189_s13 = int_to_ptr.hbm [resolvable:$true] %s188_s13 }
  0x10   : > { %p1226_p11 = pneg %p1568_p10  ;;  %s1450_s14 = smov [#allocation9]  }
  0x11   : > { %s190_s15 = sshll.u32 %s1450_s14, 4  ;;  %214 = sbr.rel (%p1568_p10) target bundleno = 1138 (0x472), region = 40  ;;  %s191_s15 = int_to_ptr.vmem [resolvable:$true] %s190_s15 }
  0x12   : > { %p1227_p12 = pnand %p1237_p9, %p1226_p11 }
  0x14   : > { %1229 = dma.hbm_to_vmem [thread:$0]  (!%p1227_p12), %s174_s8, 128, %s176_s10, [#allocation7]  }
  0x15   : > { %1232 = dma.hbm_to_vmem [thread:$0]  (!%p1227_p12), %s189_s13, 128, %s191_s15, [#allocation10]  }
  0x16   : > { %1422 = dma.done.wait (%p1237_p9), [#allocation7], 128  }
  0x17   : > { %1424 = vsyncadd (%p1237_p9), [#allocation7], 4294967168 }
  0x18   : > { %1426 = dma.done.wait (%p1237_p9), [#allocation10], 128  }
  0x19   : > { %1428 = vsyncadd (%p1237_p9), [#allocation10], 4294967168  ;;  %p248_p13 = scmp.lt.s32.totalorder %s1540_s22, 1  ;;  %s1451_s30 = smov 23   ;;  %v1467_v1 = vmov 0.0   ;;  %vm265_vm0 = vcmask 281752  }
  0x1a   : > { %s1452_s6 = smov 19   ;;  %s1453_s7 = smov 31   ;;  %253 = vst [vmem:[#allocation2] sm:$0xff] %v1467_v1  ;;  %vm254_vm1 = vcmask 568320   ;;  %vm270_vm2 = vcmask 429352   ;;  %vm275_vm3 = vcmask 576952  }
  0x1b   : > { %s249_s16 = scalar_select %p248_p13, %s1540_s22, 1  ;;  %256 = vst [vmem:[#allocation3] sm:$0xff] %v1467_v1  ;;  %vm280_vm4 = vcmask 724552   ;;  %vm285_vm5 = vcmask 872152   ;;  %vm298_vm6 = vcmask 1044472   ;;  %vm299_vm7 = vcmask 121860  }
  0x1c   : > { %s1454_s8 = smov 25   ;;  %s1455_s9 = smov 21   ;;  %257 = vst [vmem:[#allocation3 + $0x8] sm:$0xff] %v1467_v1  ;;  %vm295_vm8 = vcmask 252928   ;;  %vm290_vm9 = vcmask 1019752   ;;  %vm300_vm10 = vmor %vm299_vm7, %vm298_vm6  ;;  %vm310_vm11 = vcmask 285696  }
  0x1d   : > { %s1214_s17 = sshll.u32 %s249_s16, 3  ;;  %s1456_s10 = smov 27   ;;  %255 = vst.msk [vmem:[#allocation2 + $0x8] sm:$0xf] %vm254_vm1, %v1467_v1  ;;  %vm305_vm12 = vcmask 265352   ;;  %vm318_vm13 = vcmask 302080  }
  0x1e   : > { %s252_s26 = scalar_lea.vmem %s1834_s0, %s1214_s17  ;;  %s1457_s11 = smov 35   ;;  %vm313_vm14 = vcmask 412952   ;;  %vm334_vm15 = vcmask 334848   ;;  %vm321_vm1 = vcmask 560552   ;;  %vm350_vm6 = vcmask 367616  }
  0x1f   : > { %v260_v0 = vld [vmem:[%s252_s26] sm:$0xff]  ;;  %s1458_s12 = smov 29   ;;  %s1459_s13 = smov 37   ;;  %vm342_vm7 = vcmask 351232  }
  0x20   : > { %272 = vrot.lane.b32.xlu1 %v260_v0, %s1451_s30  ;;  %262 = vrot.lane.b32.xlu0 %v260_v0, %s1452_s6  ;;  %s1460_s14 = smov 39   ;;  %s1461_s15 = smov 33  }
  0x21   : > { %292 = vrot.lane.b32.xlu2 %v260_v0, %s1453_s7  ;;  %s1462_s16 = smov 41   ;;  %s1463_s17 = smov 45  }
  0x22   : > { %s1464_s23 = smov 43   ;;  %s1465_s25 = smov 47  }
  0x23   : > { %s1466_s26 = smov 49   ;;  %s1468_s30 = smov 127  }
  0x24   : > { %s1469_s7 = smov 126  }
  0x28   : > { %277 = vrot.lane.b32.xlu1 %v260_v0, %s1454_s8  ;;  %267 = vrot.lane.b32.xlu0 %v260_v0, %s1455_s9  ;;  %s1470_s8 = smov 110   ;;  %s1471_s9 = smov 109  }
  0x29   : > { %282 = vrot.lane.b32.xlu2 %v260_v0, %s1456_s10  ;;  %s1472_s10 = smov 108  }
  0x30   : > { %307 = vrot.lane.b32.xlu1 %v260_v0, %s1457_s11  ;;  %287 = vrot.lane.b32.xlu0 %v260_v0, %s1458_s12  ;;  %s1473_s11 = smov 92   ;;  %s1474_s12 = smov 91  }
  0x31   : > { %315 = vrot.lane.b32.xlu2 %v260_v0, %s1459_s13  ;;  %s1475_s13 = smov 90  }
  0x38   : > { %323 = vrot.lane.b32.xlu1 %v260_v0, %s1460_s14  ;;  %302 = vrot.lane.b32.xlu0 %v260_v0, %s1461_s15  ;;  %s1484_s14 = smov 122   ;;  %s1485_s15 = smov 116  }
  0x39   : > { %331 = vrot.lane.b32.xlu2 %v260_v0, %s1462_s16  ;;  %s1487_s16 = smov 118  }
  0x40   : > { %347 = vrot.lane.b32.xlu1 %v260_v0, %s1463_s17  ;;  %339 = vrot.lane.b32.xlu0 %v260_v0, %s1464_s23  ;;  %s245_s17 = sand.u32 1, %s1439_s19  }
  0x41   : > { %357 = vrot.lane.b32.xlu2 %v260_v0, %s1465_s25  ;;  %s1197_s23 = sshll.u32 %s245_s17, 4 }
  0x42   : > { %s1765_s25 = scalar_lea.vmem [#allocation11], %s1197_s23 }
  0x48   : > { %363 = vrot.lane.b32.xlu0 %v260_v0, %s1466_s26  ;;  %s1477_s26 = smov 112  }
  0x7b   : > { %v293_v2 = vpop.permute.xlu2 %292 }
  0x7c   : > { %v294_v9 = vrot.slane %v293_v2, 4 }
  0x7e   : > { %v296_v12 = vsel %vm295_vm8, %v294_v9, %v293_v2  ;;  %vm345_vm8 = vcmask 1003352  }
  0x83   : > { %v283_v3 = vpop.permute.xlu2 %282 }
  0x8b   : > { %v316_v8 = vpop.permute.xlu2 %315 }
  0x8c   : > { %v317_v15 = vrot.slane %v316_v8, 4 }
  0x8e   : > { %v319_v21 = vsel %vm318_vm13, %v316_v8, %v317_v15  ;;  %vm1840_vm13 = vcmask 1039360  }
  0x92   : > { %v273_v4 = vpop.permute.xlu1 %272  ;;  %v263_v5 = vpop.permute.xlu0 %262 }
  0x93   : > { %266 = vst.msk [vmem:[#allocation2] sm:$0xf] %vm265_vm0, %v263_v5  ;;  %v332_v13 = vpop.permute.xlu2 %331  ;;  %vm326_vm0 = vcmask 318464  }
  0x94   : > { %v333_v16 = vrot.slane %v332_v13, 4 }
  0x96   : > { %v335_v22 = vsel %vm334_vm15, %v332_v13, %v333_v16  ;;  %vm1842_vm15 = vcmask 900096  }
  0x9a   : > { %v278_v6 = vpop.permute.xlu1 %277  ;;  %v268_v7 = vpop.permute.xlu0 %267 }
  0x9b   : > { %271 = vst.msk [vmem:[#allocation2] sm:$0xf] %vm270_vm2, %v268_v7  ;;  %vm329_vm2 = vcmask 708152   ;;  %v358_v24 = vpop.permute.xlu2 %357 }
  0x9c   : > { %276 = vst.msk [vmem:[#allocation2] sm:$0xf] %vm275_vm3, %v273_v4  ;;  %vm337_vm3 = vcmask 855752   ;;  %v359_v29 = vrot.slane %v358_v24, 4 }
  0x9d   : > { %281 = vst.msk [vmem:[#allocation2] sm:$0xf] %vm280_vm4, %v278_v6  ;;  %vm353_vm4 = vcmask 1044456  }
  0x9e   : > { %286 = vst.msk [vmem:[#allocation2] sm:$0xf] %vm285_vm5, %v283_v3  ;;  %vm354_vm5 = vcmask 105476  }
  0xa2   : > { %v308_v10 = vpop.permute.xlu1 %307  ;;  %v288_v11 = vpop.permute.xlu0 %287 }
  0xa3   : > { %291 = vst.msk [vmem:[#allocation2] sm:$0xf] %vm290_vm9, %v288_v11  ;;  %v309_v14 = vrot.slane %v308_v10, 4  ;;  %vm355_vm9 = vmor %vm354_vm5, %vm353_vm4  ;;  %vm582_vm4 = vcmask 736256   ;;  %vm557_vm5 = vcmask 744448  }
  0xa4   : > { %301 = vst.msk [vmem:[#allocation2] sm:$0xff] %vm300_vm10, %v296_v12  ;;  %vm361_vm10 = vcmask 248952  }
  0xa5   : > { %v311_v19 = vsel %vm310_vm11, %v308_v10, %v309_v14  ;;  %vm367_vm11 = vcmask 396552  }
  0xaa   : > { %v324_v17 = vpop.permute.xlu1 %323  ;;  %v303_v18 = vpop.permute.xlu0 %302 }
  0xab   : > { %v325_v20 = vrot.slane %v324_v17, 4  ;;  %306 = vst.msk [vmem:[#allocation2 + $0x4] sm:$0xf] %vm305_vm12, %v303_v18  ;;  %vm384_vm12 = vcmask 257024  }
  0xac   : > { %314 = vst.msk [vmem:[#allocation2 + $0x4] sm:$0xf] %vm313_vm14, %v311_v19  ;;  %vm1841_vm14 = vcmask 1031168  }
  0xad   : > { %v327_v23 = vsel %vm326_vm0, %v324_v17, %v325_v20  ;;  %322 = vst.msk [vmem:[#allocation2 + $0x4] sm:$0xf] %vm321_vm1, %v319_v21  ;;  %vm480_vm0 = vcmask 891904   ;;  %vm506_vm1 = vcmask 883712  }
  0xae   : > { %330 = vst.msk [vmem:[#allocation2 + $0x4] sm:$0xf] %vm329_vm2, %v327_v23  ;;  %vm531_vm2 = vcmask 752640  }
  0xaf   : > { %338 = vst.msk [vmem:[#allocation2 + $0x4] sm:$0xf] %vm337_vm3, %v335_v22  ;;  %vm411_vm3 = vcmask 261124  }
  0xb2   : > { %v348_v25 = vpop.permute.xlu1 %347  ;;  %v340_v26 = vpop.permute.xlu0 %339 }
  0xb3   : > { %v349_v27 = vrot.slane %v348_v25, 4  ;;  %v341_v28 = vrot.slane %v340_v26, 4 }
  0xb5   : > { %v351_v30 = vsel %vm350_vm6, %v348_v25, %v349_v27  ;;  %v343_v31 = vsel %vm342_vm7, %v340_v26, %v341_v28  ;;  %vm617_vm6 = vcmask 1043456   ;;  %vm613_vm7 = vcmask 293888  }
  0xb6   : > { %346 = vst.msk [vmem:[#allocation2 + $0x4] sm:$0xf] %vm345_vm8, %v343_v31  ;;  %vm694_vm8 = vcmask 285848  }
  0xb7   : > { %356 = vst.msk [vmem:[#allocation2 + $0x4] sm:$0xff] %vm355_vm9, %v351_v30  ;;  %vm696_vm9 = vcmask 433448  }
  0xb8   : > { %362 = vst.msk [vmem:[#allocation2 + $0x8] sm:$0xf] %vm361_vm10, %v359_v29  ;;  %vm698_vm10 = vcmask 581048  }
  0xba   : > { %v364_v32 = vpop.permute.xlu0 %363 }
  0xbb   : > { %v365_v33 = vrot.slane %v364_v32, 4 }
  0xbd   : > { %368 = vst.msk [vmem:[#allocation2 + $0x8] sm:$0xf] %vm367_vm11, %v365_v33  ;;  %vm700_vm11 = vcmask 728648  }
  0xbe   : > { %v1602_v34 = vld [vmem:[#allocation2] sm:$0xff] }
  0xbf   : > { %373 = vst [vmem:[#allocation1] ss:$2 sm:$0xff] %v1602_v34 }
  0xc4   : > { %v370_v35 = vld [vmem:[#allocation2 + $0x8] sm:$0xf] }
  0xc5   : > { %375 = vst [vmem:[#allocation1 + $0x10] ss:$2 sm:$0xff] %v370_v35  ;;  %v387_v39 = vld [vmem:[#allocation2 + $0x8] sm:$0xf] }
  0xc6   : > { %v376_v36 = vld.sshfl [vmem:[#allocation1] sm:$0xff pattern:$0x75316420]  ;;  %v377_v37 = vld.sshfl [vmem:[#allocation1 + $0x8] sm:$0xff pattern:$0x75316420] }
  0xc7   : > { %382 = vst [vmem:[#allocation4] sm:$0xf] %v376_v36  ;;  %v414_v43 = vld [vmem:[#allocation2 + $0x8] sm:$0xf] }
  0xc8   : > { %391 = vst [vmem:[#allocation1 + $0x1] ss:$2 sm:$0xff] %v1602_v34  ;;  %v439_v47 = vld [vmem:[#allocation2 + $0x8] sm:$0xf] }
  0xc9   : > { %383 = vst [vmem:[#allocation4 + $0x8] sm:$0xf] %v377_v37  ;;  %v465_v50 = vld [vmem:[#allocation2 + $0x8] sm:$0xf] }
  0xca   : > { %v490_v54 = vld [vmem:[#allocation2 + $0x8] sm:$0xf] }
  0xcb   : > { %v516_v58 = vld [vmem:[#allocation2 + $0x8] sm:$0xf] }
  0xcc   : > { %v378_v38 = vld.sshfl [vmem:[#allocation1 + $0x10] sm:$0xff pattern:$0x75316420] }
  0xcd   : > { %393 = vst [vmem:[#allocation1 + $0x11] ss:$2 sm:$0xff] %v387_v39  ;;  %v541_v62 = vld [vmem:[#allocation2 + $0x8] sm:$0xf]  ;;  %v1476_v39 = vmov 0  }
  0xce   : > { %385 = vst.msk [vmem:[#allocation4 + $0x10] sm:$0xf] %vm384_vm12, %v378_v38  ;;  %v567_v3 = vld [vmem:[#allocation2 + $0x8] sm:$0xf]  ;;  %v607_v38 = vld [vmem:[%s1836_s2] sm:$0xff]  ;;  %1314 = vset.pattern.permute.xlu1 %v1476_v39  ;;  %1315 = vset.pattern.permute.xlu2 %v1476_v39 }
  0xcf   : > { %v395_v40 = vld.sshfl [vmem:[#allocation1 + $0x8] sm:$0xff pattern:$0x75316420]  ;;  %v394_v41 = vld.sshfl [vmem:[#allocation1] sm:$0xff pattern:$0x75316420]  ;;  %1316 = vset.pattern.permute.xlu0 %v1476_v39 }
  0xd0   : > { %399 = vrot.lane.b32.xlu2 %v395_v40, %s1468_s30  ;;  %397 = vrot.lane.b32.xlu1 %v394_v41, %s1468_s30  ;;  %417 = vst [vmem:[#allocation1] ss:$2 sm:$0xff] %v1602_v34 }
  0xd4   : > { %v1610_v42 = vld.sshfl [vmem:[#allocation1 + $0x10] sm:$0xff pattern:$0x75316420] }
  0xd5   : > { %419 = vst [vmem:[#allocation1 + $0x10] ss:$2 sm:$0xff] %v414_v43 }
  0xd7   : > { %v421_v44 = vld.sshfl [vmem:[#allocation1 + $0x8] sm:$0xff pattern:$0x75316420]  ;;  %v420_v45 = vld.sshfl [vmem:[#allocation1] sm:$0xff pattern:$0x75316420] }
  0xd8   : > { %425 = vrot.lane.b32.xlu0 %v421_v44, %s1469_s7  ;;  %423 = vrot.lane.b32.xlu2 %v420_v45, %s1469_s7  ;;  %443 = vst [vmem:[#allocation1 + $0x1] ss:$2 sm:$0xff] %v1602_v34 }
  0xdc   : > { %v422_v46 = vld.sshfl [vmem:[#allocation1 + $0x10] sm:$0xff pattern:$0x75316420] }
  0xdd   : > { %445 = vst [vmem:[#allocation1 + $0x11] ss:$2 sm:$0xff] %v439_v47 }
  0xdf   : > { %v447_v48 = vld.sshfl [vmem:[#allocation1 + $0x8] sm:$0xff pattern:$0x75316420]  ;;  %v446_v49 = vld.sshfl [vmem:[#allocation1] sm:$0xff pattern:$0x75316420] }
  0xe0   : > { %451 = vrot.lane.b32.xlu2 %v447_v48, %s1470_s8  ;;  %449 = vrot.lane.b32.xlu1 %v446_v49, %s1470_s8  ;;  %468 = vst [vmem:[#allocation1] ss:$2 sm:$0xff] %v1602_v34  ;;  %v591_v49 = vld [vmem:[#allocation6] sm:$0xff] }
  0xe4   : > { %v448_v51 = vld.sshfl [vmem:[#allocation1 + $0x10] sm:$0xff pattern:$0x75316420] }
  0xe5   : > { %470 = vst [vmem:[#allocation1 + $0x10] ss:$2 sm:$0xff] %v465_v50 }
  0xe7   : > { %v472_v52 = vld.sshfl [vmem:[#allocation1 + $0x8] sm:$0xff pattern:$0x75316420]  ;;  %v471_v53 = vld.sshfl [vmem:[#allocation1] sm:$0xff pattern:$0x75316420] }
  0xe8   : > { %476 = vrot.lane.b32.xlu2 %v472_v52, %s1471_s9  ;;  %474 = vrot.lane.b32.xlu1 %v471_v53, %s1471_s9  ;;  %494 = vst [vmem:[#allocation1 + $0x1] ss:$2 sm:$0xff] %v1602_v34 }
  0xec   : > { %v473_v55 = vld.sshfl [vmem:[#allocation1 + $0x10] sm:$0xff pattern:$0x75316420] }
  0xed   : > { %496 = vst [vmem:[#allocation1 + $0x11] ss:$2 sm:$0xff] %v490_v54 }
  0xef   : > { %v498_v56 = vld.sshfl [vmem:[#allocation1 + $0x8] sm:$0xff pattern:$0x75316420]  ;;  %v497_v57 = vld.sshfl [vmem:[#allocation1] sm:$0xff pattern:$0x75316420] }
  0xf0   : > { %502 = vrot.lane.b32.xlu1 %v498_v56, %s1472_s10  ;;  %500 = vrot.lane.b32.xlu0 %v497_v57, %s1472_s10  ;;  %519 = vst [vmem:[#allocation1] ss:$2 sm:$0xff] %v1602_v34 }
  0xf4   : > { %v499_v59 = vld.sshfl [vmem:[#allocation1 + $0x10] sm:$0xff pattern:$0x75316420] }
  0xf5   : > { %521 = vst [vmem:[#allocation1 + $0x10] ss:$2 sm:$0xff] %v516_v58 }
  0xf7   : > { %v523_v60 = vld.sshfl [vmem:[#allocation1 + $0x8] sm:$0xff pattern:$0x75316420]  ;;  %v522_v61 = vld.sshfl [vmem:[#allocation1] sm:$0xff pattern:$0x75316420] }
  0xf8   : > { %527 = vrot.lane.b32.xlu1 %v523_v60, %s1473_s11  ;;  %525 = vrot.lane.b32.xlu0 %v522_v61, %s1473_s11  ;;  %545 = vst [vmem:[#allocation1 + $0x1] ss:$2 sm:$0xff] %v1602_v34 }
  0xfc   : > { %v524_v63 = vld.sshfl [vmem:[#allocation1 + $0x10] sm:$0xff pattern:$0x75316420] }
  0xfd   : > { %547 = vst [vmem:[#allocation1 + $0x11] ss:$2 sm:$0xff] %v541_v62 }
  0xff   : > { %v549_v0 = vld.sshfl [vmem:[#allocation1 + $0x8] sm:$0xff pattern:$0x75316420]  ;;  %v548_v2 = vld.sshfl [vmem:[#allocation1] sm:$0xff pattern:$0x75316420] }
 0x100   : > { %551 = vrot.lane.b32.xlu2 %v548_v2, %s1474_s12  ;;  %570 = vst [vmem:[#allocation1] ss:$2 sm:$0xff] %v1602_v34  ;;  %529 = vrot.lane.b32.xlu0 %v524_v63, %s1473_s11 }
 0x104   : > { %v550_v4 = vld.sshfl [vmem:[#allocation1 + $0x10] sm:$0xff pattern:$0x75316420] }
 0x105   : > { %572 = vst [vmem:[#allocation1 + $0x10] ss:$2 sm:$0xff] %v567_v3 }
 0x107   : > { %v574_v5 = vld.sshfl [vmem:[#allocation1 + $0x8] sm:$0xff pattern:$0x75316420]  ;;  %v573_v6 = vld.sshfl [vmem:[#allocation1] sm:$0xff pattern:$0x75316420] }
 0x108   : > { %578 = vrot.lane.b32.xlu2 %v574_v5, %s1475_s13  ;;  %576 = vrot.lane.b32.xlu1 %v573_v6, %s1475_s13 }
 0x109   : > { %553 = vrot.lane.b32.xlu0 %v549_v0, %s1474_s12 }
 0x10c   : > { %v575_v7 = vld.sshfl [vmem:[#allocation1 + $0x10] sm:$0xff pattern:$0x75316420] }
 0x110   : > { %478 = vrot.lane.b32.xlu2 %v473_v55, %s1471_s9  ;;  %555 = vrot.lane.b32.xlu1 %v550_v4, %s1474_s12 }
 0x111   : > { %504 = vrot.lane.b32.xlu0 %v499_v59, %s1472_s10 }
 0x118   : > { %453 = vrot.lane.b32.xlu2 %v448_v51, %s1470_s8  ;;  %427 = vrot.lane.b32.xlu1 %v422_v46, %s1469_s7 }
 0x119   : > { %580 = vrot.lane.b32.xlu0 %v575_v7, %s1475_s13 }
 0x120   : > { %610 = vperm.xlu1 %1314, %v607_v38  }
 0x121   : > { %401 = vrot.lane.b32.xlu0 %v1610_v42, %s1468_s30 }
 0x12a   : > { %v1641_v8 = vpop.permute.xlu2 %399 }
 0x132   : > { %v424_v9 = vpop.permute.xlu2 %423 }
 0x13a   : > { %v452_v12 = vpop.permute.xlu2 %451 }
 0x142   : > { %v398_v10 = vpop.permute.xlu1 %397  ;;  %v477_v15 = vpop.permute.xlu2 %476 }
 0x143   : > { %v404_v11 = vsel %vm1840_vm13, %v398_v10, %v1641_v8 }
 0x144   : > { %409 = vst [vmem:[#allocation4] sm:$0xf0] %v404_v11 }
 0x14a   : > { %v1645_v13 = vpop.permute.xlu0 %425 }
 0x14b   : > { %v430_v14 = vsel %vm1841_vm14, %v424_v9, %v1645_v13  ;;  %v592_v52 = vld [vmem:[#allocation4] sm:$0xff] }
 0x14c   : > { %435 = vst [vmem:[#allocation4 + $0x18] sm:$0xf] %v430_v14 }
 0x152   : > { %v450_v16 = vpop.permute.xlu1 %449 }
 0x153   : > { %v456_v17 = vsel %vm1842_vm15, %v450_v16, %v452_v12 }
 0x154   : > { %461 = vst [vmem:[#allocation4 + $0x18] sm:$0xf0] %v456_v17 }
 0x15a   : > { %v475_v18 = vpop.permute.xlu1 %474  ;;  %v552_v19 = vpop.permute.xlu2 %551 }
 0x15b   : > { %v481_v20 = vsel %vm480_vm0, %v475_v18, %v477_v15  ;;  %v595_v47 = vld [vmem:[#allocation4 + $0x18] sm:$0xff] }
 0x15c   : > { %486 = vst [vmem:[#allocation4 + $0x30] sm:$0xf] %v481_v20 }
 0x162   : > { %v503_v21 = vpop.permute.xlu1 %502  ;;  %v501_v22 = vpop.permute.xlu0 %500 }
 0x163   : > { %v507_v23 = vsel %vm506_vm1, %v501_v22, %v503_v21  ;;  %v579_v24 = vpop.permute.xlu2 %578 }
 0x164   : > { %512 = vst [vmem:[#allocation4 + $0x30] sm:$0xf0] %v507_v23 }
 0x16a   : > { %v528_v25 = vpop.permute.xlu1 %527  ;;  %v526_v26 = vpop.permute.xlu0 %525 }
 0x16b   : > { %v532_v27 = vsel %vm531_vm2, %v526_v26, %v528_v25  ;;  %v479_v28 = vpop.permute.xlu2 %478  ;;  %v598_v46 = vld [vmem:[#allocation4 + $0x30] sm:$0xff] }
 0x16c   : > { %537 = vst [vmem:[#allocation4 + $0x48] sm:$0xf] %v532_v27  ;;  %v482_v29 = vsel %vm480_vm0, %v477_v15, %v479_v28 }
 0x16d   : > { %487 = vst [vmem:[#allocation4 + $0x38] sm:$0xf] %v482_v29 }
 0x16e   : > { %488 = vst.msk [vmem:[#allocation4 + $0x40] sm:$0xf] %vm384_vm12, %v479_v28 }
 0x172   : > { %v530_v30 = vpop.permute.xlu0 %529 }
 0x173   : > { %v454_v31 = vpop.permute.xlu2 %453  ;;  %v533_v32 = vsel %vm531_vm2, %v528_v25, %v530_v30  ;;  %539 = vst.msk [vmem:[#allocation4 + $0x58] sm:$0xf] %vm384_vm12, %v530_v30 }
 0x174   : > { %v457_v33 = vsel %vm1842_vm15, %v452_v12, %v454_v31  ;;  %463 = vst.msk [vmem:[#allocation4 + $0x28] sm:$0xf0] %vm411_vm3, %v454_v31  ;;  %vm741_vm15 = vcmask 400648  }
 0x175   : > { %462 = vst [vmem:[#allocation4 + $0x20] sm:$0xf0] %v457_v33 }
 0x176   : > { %538 = vst [vmem:[#allocation4 + $0x50] sm:$0xf] %v533_v32 }
 0x17a   : > { %v577_v34 = vpop.permute.xlu1 %576 }
 0x17b   : > { %v583_v35 = vsel %vm582_vm4, %v577_v34, %v579_v24  ;;  %v554_v36 = vpop.permute.xlu0 %553 }
 0x17c   : > { %588 = vst [vmem:[#allocation4 + $0x60] sm:$0xf] %v583_v35  ;;  %v558_v37 = vsel %vm557_vm5, %v552_v19, %v554_v36 }
 0x17d   : > { %563 = vst [vmem:[#allocation4 + $0x48] sm:$0xf0] %v558_v37 }
 0x182   : > { %v556_v40 = vpop.permute.xlu1 %555 }
 0x183   : > { %v505_v41 = vpop.permute.xlu0 %504  ;;  %v559_v42 = vsel %vm557_vm5, %v554_v36, %v556_v40  ;;  %565 = vst.msk [vmem:[#allocation4 + $0x58] sm:$0xf0] %vm411_vm3, %v556_v40  ;;  %v604_v43 = vld [vmem:[#allocation4 + $0x60] sm:$0xf] }
 0x184   : > { %v508_v44 = vsel %vm506_vm1, %v503_v21, %v505_v41  ;;  %514 = vst.msk [vmem:[#allocation4 + $0x40] sm:$0xf0] %vm411_vm3, %v505_v41  ;;  %1200 = vmatpush.msk.msra.mxu2 %vm617_vm6, %v604_v43  ;;  %v601_v45 = vld [vmem:[#allocation4 + $0x48] sm:$0xff] }
 0x185   : > { %513 = vst [vmem:[#allocation4 + $0x38] sm:$0xf0] %v508_v44 }
 0x186   : > { %564 = vst [vmem:[#allocation4 + $0x50] sm:$0xf0] %v559_v42  ;;  %639 = vmatpush.msra.mxu2 %v601_v45 }
 0x188   : > { %640 = vmatpush.msra.mxu2 %v598_v46 }
 0x18a   : > { %641 = vmatpush.msra.mxu2 %v595_v47  ;;  %v428_v48 = vpop.permute.xlu1 %427  ;;  %v603_v59 = vld [vmem:[#allocation4 + $0x58] sm:$0xff] }
 0x18b   : > { %v431_v50 = vsel %vm1841_vm14, %v1645_v13, %v428_v48  ;;  %437 = vst.msk [vmem:[#allocation4 + $0x28] sm:$0xf] %vm384_vm12, %v428_v48  ;;  %v581_v51 = vpop.permute.xlu0 %580  ;;  %v600_v61 = vld [vmem:[#allocation4 + $0x40] sm:$0xff]  ;;  %vm738_vm14 = vcmask 253048  }
 0x18c   : > { %436 = vst [vmem:[#allocation4 + $0x20] sm:$0xf] %v431_v50  ;;  %v584_v53 = vsel %vm582_vm4, %v579_v24, %v581_v51  ;;  %642 = vmatpush.msra.mxu2 %v592_v52  ;;  %v599_v60 = vld [vmem:[#allocation4 + $0x38] sm:$0xff] }
 0x18d   : > { %589 = vst [vmem:[#allocation4 + $0x68] sm:$0xf] %v584_v53  ;;  %1201 = vmatmul.msk.f32.vlgmr.msra.gmra.mxu2 %vm613_vm7, %v591_v49  ;;  %v602_v58 = vld [vmem:[#allocation4 + $0x50] sm:$0xff] }
 0x18e   : > { %590 = vst.msk [vmem:[#allocation4 + $0x70] sm:$0xf] %vm384_vm12, %v581_v51  ;;  %vm702_vm12 = vcmask 876248  }
 0x192   : > { %v597_v63 = vld [vmem:[#allocation4 + $0x28] sm:$0xff]  ;;  %v611_v3 = vpop.permute.xlu1 %610 }
 0x193   : > { %v402_v54 = vpop.permute.xlu0 %401  ;;  %v596_v62 = vld [vmem:[#allocation4 + $0x20] sm:$0xff] }
 0x194   : > { %v405_v55 = vsel %vm1840_vm13, %v1641_v8, %v402_v54  ;;  %412 = vst.msk [vmem:[#allocation4 + $0x10] sm:$0xf0] %vm411_vm3, %v402_v54  ;;  %v605_v56 = vld [vmem:[#allocation4 + $0x68] sm:$0xf]  ;;  %vm704_vm3 = vcmask 1023848   ;;  %vm708_vm13 = vcmask 121856  }
 0x195   : > { %410 = vst [vmem:[#allocation4 + $0x8] sm:$0xf0] %v405_v55  ;;  %v606_v57 = vld [vmem:[#allocation4 + $0x70] sm:$0xf]  ;;  %1202 = vmatpush.msk.msra.mxu1 %vm617_vm6, %v605_v56 }
 0x196   : > { %1204 = vmatpush.msk.msrb.mxu2 %vm617_vm6, %v606_v57  ;;  %vm706_vm6 = vcmask 1048568  }
 0x197   : > { %659 = vmatpush.msra.mxu1 %v602_v58  ;;  %v938_v58 = vld [vmem:[%s1838_s4] sm:$0xff] }
 0x198   : > { %679 = vmatpush.msrb.mxu2 %v603_v59 }
 0x199   : > { %660 = vmatpush.msra.mxu1 %v599_v60 }
 0x19a   : > { %680 = vmatpush.msrb.mxu2 %v600_v61 }
 0x19b   : > { %661 = vmatpush.msra.mxu1 %v596_v62  ;;  %v594_v0 = vld [vmem:[#allocation4 + $0x10] sm:$0xff] }
 0x19c   : > { %681 = vmatpush.msrb.mxu2 %v597_v63  ;;  %v593_v2 = vld [vmem:[#allocation4 + $0x8] sm:$0xff] }
 0x19d   : > { %662 = vmatpush.msra.mxu1 %v593_v2 }
 0x19e   : > { %682 = vmatpush.msrb.mxu2 %v594_v0  ;;  %1203 = vmatmul.msk.f32.vlgmr.msra.gmra.mxu1 %vm613_vm7, %v591_v49 }
 0x19f   : > { %1205 = vmatmul.msk.f32.vlgmr.msrb.gmra.mxu2 %vm613_vm7, %v591_v49  ;;  %vm258_vm7 = vcmask 572416  }
 0x1a0   : > { %259 = vst.msk [vmem:[#allocation3 + $0x10] sm:$0xff] %vm258_vm7, %v1467_v1  ;;  %vm729_vm7 = vcmask 1048552  }
 0x210   : > { %v644_v4 = vpop.f32.mrf.mxu2 }
 0x211   : > { %v645_v5 = vadd.f32 %v644_v4, %v611_v3 }
 0x213   : > { %v687_v6 = vmax.f32 %v645_v5, 0.0 }
 0x215   : > { %691 = vrot.lane.b32.xlu2 %v687_v6, %s1452_s6 }
 0x21b   : > { %v664_v7 = vpop.f32.mrf.mxu1 }
 0x21c   : > { %v665_v8 = vadd.f32 %v664_v7, %v611_v3 }
 0x21e   : > { %v688_v9 = vmax.f32 %v665_v8, 0.0 }
 0x220   : > { %711 = vrot.lane.b32.xlu0 %v688_v9, %s1452_s6 }
 0x222   : > { %v684_v10 = vpop.f32.mrf.mxu2 }
 0x223   : > { %v685_v11 = vadd.f32 %v684_v10, %v611_v3  ;;  %v910_v3 = vld [vmem:[#allocation9] sm:$0xff] }
 0x225   : > { %v689_v12 = vmax.f32 %v685_v11, 0.0 }
 0x227   : > { %734 = vrot.lane.b32.xlu1 %v689_v12, %s1452_s6  ;;  %s1486_s6 = smov 114  }
 0x26f   : > { %v692_v13 = vpop.permute.xlu2 %691 }
 0x270   : > { %695 = vst.msk [vmem:[#allocation3] sm:$0xff] %vm694_vm8, %v692_v13  ;;  %vm713_vm8 = vcmask 154624  }
 0x271   : > { %697 = vst.msk [vmem:[#allocation3] sm:$0xff] %vm696_vm9, %v692_v13  ;;  %vm731_vm9 = vcmask 105472  }
 0x272   : > { %699 = vst.msk [vmem:[#allocation3] sm:$0xff] %vm698_vm10, %v692_v13  ;;  %vm719_vm10 = vcmask 417048  }
 0x273   : > { %701 = vst.msk [vmem:[#allocation3] sm:$0xff] %vm700_vm11, %v692_v13  ;;  %vm721_vm11 = vcmask 564648  }
 0x274   : > { %703 = vst.msk [vmem:[#allocation3] sm:$0xff] %vm702_vm12, %v692_v13  ;;  %vm723_vm12 = vcmask 712248  }
 0x275   : > { %705 = vst.msk [vmem:[#allocation3] sm:$0xff] %vm704_vm3, %v692_v13  ;;  %vm725_vm3 = vcmask 859848  }
 0x276   : > { %707 = vst.msk [vmem:[#allocation3] sm:$0xff] %vm706_vm6, %v692_v13  ;;  %vm727_vm6 = vcmask 1007448  }
 0x277   : > { %709 = vst.msk [vmem:[#allocation3 + $0x8] sm:$0xff] %vm708_vm13, %v692_v13  ;;  %vm716_vm13 = vcmask 269448  }
 0x27d   : > { %v1686_v14 = vld [vmem:[#allocation3] sm:$0xff] }
 0x27e   : > { %856 = vrot.lane.b32.xlu0 %v1686_v14, %s1473_s11  ;;  %896 = vrot.lane.b32.xlu2 %v1686_v14, %s1475_s13 }
 0x27f   : > { %876 = vrot.lane.b32.xlu1 %v1686_v14, %s1474_s12 }
 0x286   : > { %836 = vrot.lane.b32.xlu0 %v1686_v14, %s1472_s10 }
 0x28e   : > { %816 = vrot.lane.b32.xlu0 %v1686_v14, %s1471_s9 }
 0x292   : > { %v712_v1 = vpop.permute.xlu0 %711 }
 0x293   : > { %v714_v15 = vsel %vm713_vm8, %v692_v13, %v712_v1  ;;  %732 = vst.msk [vmem:[#allocation3 + $0x10] sm:$0xff] %vm731_vm9, %v712_v1  ;;  %vm748_vm9 = vcmask 261120  }
 0x294   : > { %717 = vst.msk [vmem:[#allocation3 + $0x8] sm:$0xff] %vm716_vm13, %v714_v15  ;;  %vm1017_vm13 = vcmask 261248  }
 0x295   : > { %720 = vst.msk [vmem:[#allocation3 + $0x8] sm:$0xff] %vm719_vm10, %v712_v1  ;;  %vm1022_vm10 = vcmask 392448  }
 0x296   : > { %796 = vrot.lane.b32.xlu0 %v1686_v14, %s1470_s8  ;;  %722 = vst.msk [vmem:[#allocation3 + $0x8] sm:$0xff] %vm721_vm11, %v712_v1  ;;  %vm1027_vm11 = vcmask 523648  }
 0x297   : > { %724 = vst.msk [vmem:[#allocation3 + $0x8] sm:$0xff] %vm723_vm12, %v712_v1  ;;  %vm1032_vm12 = vcmask 654848  }
 0x298   : > { %726 = vst.msk [vmem:[#allocation3 + $0x8] sm:$0xff] %vm725_vm3, %v712_v1  ;;  %vm1083_vm3 = vcmask 818176  }
 0x299   : > { %728 = vst.msk [vmem:[#allocation3 + $0x8] sm:$0xff] %vm727_vm6, %v712_v1  ;;  %v735_v16 = vpop.permute.xlu1 %734  ;;  %vm1037_vm6 = vcmask 786048  }
 0x29a   : > { %v736_v17 = vsel %vm713_vm8, %v712_v1, %v735_v16  ;;  %730 = vst.msk [vmem:[#allocation3 + $0x8] sm:$0xff] %vm729_vm7, %v712_v1  ;;  %vm1011_vm8 = vcmask 130048   ;;  %vm1042_vm7 = vcmask 917248  }
 0x29b   : > { %739 = vst.msk [vmem:[#allocation3 + $0x10] sm:$0xff] %vm738_vm14, %v736_v17  ;;  %vm1846_vm14 = vcmask 900096  }
 0x29c   : > { %742 = vst.msk [vmem:[#allocation3 + $0x10] sm:$0xff] %vm741_vm15, %v735_v16  ;;  %vm1847_vm15 = vmmov %vm1846_vm14 }
 0x2a1   : > { %v1702_v18 = vld [vmem:[#allocation3 + $0x8] sm:$0xff] }
 0x2a2   : > { %898 = vrot.lane.b32.xlu0 %v1702_v18, %s1475_s13  ;;  %878 = vrot.lane.b32.xlu2 %v1702_v18, %s1474_s12 }
 0x2a3   : > { %858 = vrot.lane.b32.xlu1 %v1702_v18, %s1473_s11  ;;  %v892_v19 = vld [vmem:[#allocation3 + $0x10] sm:$0xff] }
 0x2a4   : > { %749 = vst.msk [vmem:[#allocation5 + $0x10] sm:$0xff] %vm748_vm9, %v892_v19 }
 0x2aa   : > { %776 = vrot.lane.b32.xlu0 %v1686_v14, %s1469_s7  ;;  %900 = vrot.lane.b32.xlu2 %v892_v19, %s1475_s13  ;;  %s1482_s13 = smov 106  }
 0x2ab   : > { %838 = vrot.lane.b32.xlu1 %v1702_v18, %s1472_s10  ;;  %v913_v7 = vld [vmem:[#allocation5 + $0x10] sm:$0xff] }
 0x2b2   : > { %756 = vrot.lane.b32.xlu0 %v1686_v14, %s1468_s30  ;;  %880 = vrot.lane.b32.xlu2 %v892_v19, %s1474_s12  ;;  %s1481_s12 = smov 124  }
 0x2b3   : > { %818 = vrot.lane.b32.xlu1 %v1702_v18, %s1471_s9 }
 0x2ba   : > { %860 = vrot.lane.b32.xlu2 %v892_v19, %s1473_s11  ;;  %780 = vrot.lane.b32.xlu0 %v892_v19, %s1469_s7  ;;  %s1480_s11 = smov 104  }
 0x2bb   : > { %798 = vrot.lane.b32.xlu1 %v1702_v18, %s1470_s8 }
 0x2c2   : > { %840 = vrot.lane.b32.xlu2 %v892_v19, %s1472_s10 }
 0x2c3   : > { %778 = vrot.lane.b32.xlu1 %v1702_v18, %s1469_s7 }
 0x2ca   : > { %820 = vrot.lane.b32.xlu2 %v892_v19, %s1471_s9  ;;  %s1479_s9 = smov 102  }
 0x2cb   : > { %758 = vrot.lane.b32.xlu1 %v1702_v18, %s1468_s30 }
 0x2d2   : > { %800 = vrot.lane.b32.xlu2 %v892_v19, %s1470_s8 }
 0x2d3   : > { %760 = vrot.lane.b32.xlu1 %v892_v19, %s1468_s30  ;;  %s1478_s30 = smov 100  }
 0x2d8   : > { %v897_v21 = vpop.permute.xlu2 %896 }
 0x2da   : > { %941 = vperm.xlu2 %1315, %v938_v58  }
 0x2f0   : > { %v857_v20 = vpop.permute.xlu0 %856 }
 0x2f1   : > { %v877_v23 = vpop.permute.xlu1 %876 }
 0x2f8   : > { %v837_v22 = vpop.permute.xlu0 %836 }
 0x2fc   : > { %v879_v24 = vpop.permute.xlu2 %878 }
 0x2fd   : > { %v882_v25 = vsel %vm557_vm5, %v877_v23, %v879_v24 }
 0x300   : > { %v817_v26 = vpop.permute.xlu0 %816 }
 0x304   : > { %v901_v27 = vpop.permute.xlu2 %900 }
 0x305   : > { %909 = vst.msk [vmem:[#allocation5 + $0xd0] sm:$0xff] %vm748_vm9, %v901_v27 }
 0x308   : > { %v797_v28 = vpop.permute.xlu0 %796 }
 0x30c   : > { %v881_v29 = vpop.permute.xlu2 %880  ;;  %v937_v30 = vld [vmem:[#allocation5 + $0xd0] sm:$0xff] }
 0x30d   : > { %v883_v31 = vsel %vm557_vm5, %v879_v24, %v881_v29  ;;  %889 = vst.msk [vmem:[#allocation5 + $0xb8] sm:$0xff] %vm748_vm9, %v881_v29  ;;  %995 = vmatpush.msrb.mxu1 %v937_v30 }
 0x314   : > { %v899_v32 = vpop.permute.xlu0 %898  ;;  %v861_v33 = vpop.permute.xlu2 %860  ;;  %v934_v34 = vld [vmem:[#allocation5 + $0xb8] sm:$0xff] }
 0x315   : > { %v902_v35 = vsel %vm582_vm4, %v897_v21, %v899_v32  ;;  %v903_v36 = vsel %vm582_vm4, %v899_v32, %v901_v27  ;;  %869 = vst.msk [vmem:[#allocation5 + $0xa0] sm:$0xff] %vm748_vm9, %v861_v33  ;;  %v859_v37 = vpop.permute.xlu1 %858  ;;  %996 = vmatpush.msrb.mxu1 %v934_v34  ;;  %vm944_vm4 = vcmask 588800  }
 0x316   : > { %v862_v38 = vsel %vm531_vm2, %v857_v20, %v859_v37  ;;  %v863_v39 = vsel %vm531_vm2, %v859_v37, %v861_v33  ;;  %955 = vmatpush.msra.mxu3 %v902_v35  ;;  %975 = vmatpush.msra.mxu0 %v903_v36  ;;  %vm1850_vm2 = vcmask 1039360  }
 0x317   : > { %vm1851_vm5 = vmmov %vm1850_vm2 }
 0x318   : > { %956 = vmatpush.msra.mxu3 %v882_v25  ;;  %976 = vmatpush.msra.mxu0 %v883_v31 }
 0x31a   : > { %957 = vmatpush.msra.mxu3 %v862_v38  ;;  %977 = vmatpush.msra.mxu0 %v863_v39 }
 0x31c   : > { %v777_v40 = vpop.permute.xlu0 %776  ;;  %v841_v41 = vpop.permute.xlu2 %840  ;;  %v931_v42 = vld [vmem:[#allocation5 + $0xa0] sm:$0xff] }
 0x31d   : > { %849 = vst.msk [vmem:[#allocation5 + $0x88] sm:$0xff] %vm748_vm9, %v841_v41  ;;  %v839_v43 = vpop.permute.xlu1 %838  ;;  %997 = vmatpush.msrb.mxu1 %v931_v42 }
 0x31e   : > { %v842_v44 = vsel %vm506_vm1, %v837_v22, %v839_v43  ;;  %v843_v45 = vsel %vm506_vm1, %v839_v43, %v841_v41 }
 0x31f   : > { %958 = vmatpush.msra.mxu3 %v842_v44  ;;  %978 = vmatpush.msra.mxu0 %v843_v45 }
 0x324   : > { %v757_v46 = vpop.permute.xlu0 %756  ;;  %v821_v47 = vpop.permute.xlu2 %820  ;;  %v928_v48 = vld [vmem:[#allocation5 + $0x88] sm:$0xff] }
 0x325   : > { %829 = vst.msk [vmem:[#allocation5 + $0x70] sm:$0xff] %vm748_vm9, %v821_v47  ;;  %v819_v49 = vpop.permute.xlu1 %818  ;;  %998 = vmatpush.msrb.mxu1 %v928_v48 }
 0x326   : > { %v822_v50 = vsel %vm480_vm0, %v817_v26, %v819_v49  ;;  %v823_v51 = vsel %vm480_vm0, %v819_v49, %v821_v47  ;;  %vm1848_vm0 = vcmask 1031168  }
 0x327   : > { %959 = vmatpush.msra.mxu3 %v822_v50  ;;  %979 = vmatpush.msra.mxu0 %v823_v51  ;;  %vm1849_vm1 = vmmov %vm1848_vm0 }
 0x32c   : > { %v801_v52 = vpop.permute.xlu2 %800  ;;  %v781_v53 = vpop.permute.xlu0 %780  ;;  %v925_v54 = vld [vmem:[#allocation5 + $0x70] sm:$0xff] }
 0x32d   : > { %809 = vst.msk [vmem:[#allocation5 + $0x58] sm:$0xff] %vm748_vm9, %v801_v52  ;;  %v799_v55 = vpop.permute.xlu1 %798  ;;  %999 = vmatpush.msrb.mxu1 %v925_v54 }
 0x32e   : > { %789 = vst.msk [vmem:[#allocation5 + $0x40] sm:$0xff] %vm748_vm9, %v781_v53  ;;  %v802_v56 = vsel %vm1846_vm14, %v797_v28, %v799_v55  ;;  %v803_v57 = vsel %vm1847_vm15, %v799_v55, %v801_v52  ;;  %vm1049_vm14 = vcmask 932864  }
 0x32f   : > { %960 = vmatpush.msra.mxu3 %v802_v56  ;;  %980 = vmatpush.msra.mxu0 %v803_v57 }
 0x334   : > { %v922_v59 = vld [vmem:[#allocation5 + $0x58] sm:$0xff]  ;;  %v942_v8 = vpop.permute.xlu2 %941 }
 0x335   : > { %v779_v60 = vpop.permute.xlu1 %778  ;;  %1000 = vmatpush.msrb.mxu1 %v922_v59  ;;  %v919_v63 = vld [vmem:[#allocation5 + $0x40] sm:$0xff] }
 0x336   : > { %v782_v61 = vsel %vm1848_vm0, %v777_v40, %v779_v60  ;;  %v783_v62 = vsel %vm1849_vm1, %v779_v60, %v781_v53 }
 0x337   : > { %1001 = vmatpush.msrb.mxu1 %v919_v63  ;;  %961 = vmatpush.msra.mxu3 %v782_v61 }
 0x338   : > { %981 = vmatpush.msra.mxu0 %v783_v62 }
 0x33d   : > { %v759_v0 = vpop.permute.xlu1 %758 }
 0x33e   : > { %v762_v2 = vsel %vm1850_vm2, %v757_v46, %v759_v0 }
 0x33f   : > { %962 = vmatpush.msra.mxu3 %v762_v2 }
 0x341   : > { %963 = vmatpush.msra.mxu3 %v1686_v14 }
 0x342   : > { %1206 = vmatmul.msk.f32.vlgmr.msra.gmra.mxu3 %vm944_vm4, %v910_v3 }
 0x345   : > { %v761_v4 = vpop.permute.xlu1 %760 }
 0x346   : > { %v763_v5 = vsel %vm1851_vm5, %v759_v0, %v761_v4  ;;  %769 = vst.msk [vmem:[#allocation5 + $0x28] sm:$0xff] %vm748_vm9, %v761_v4  ;;  %vm1052_vm9 = vcmask 1048448  }
 0x347   : > { %982 = vmatpush.msra.mxu0 %v763_v5 }
 0x349   : > { %983 = vmatpush.msra.mxu0 %v1702_v18 }
 0x34a   : > { %1207 = vmatmul.msk.f32.vlgmr.msra.gmra.mxu0 %vm944_vm4, %v910_v3 }
 0x34d   : > { %v916_v6 = vld [vmem:[#allocation5 + $0x28] sm:$0xff] }
 0x34e   : > { %1002 = vmatpush.msrb.mxu1 %v916_v6 }
 0x350   : > { %1003 = vmatpush.msrb.mxu1 %v913_v7 }
 0x351   : > { %1208 = vmatmul.msk.f32.vlgmr.msrb.gmra.mxu1 %vm944_vm4, %v910_v3 }
 0x3c5   : > { %v965_v9 = vpop.f32.mrf.mxu3 }
 0x3c6   : > { %v966_v10 = vadd.f32 %v965_v9, %v942_v8 }
 0x3c7   : > { %v985_v11 = vpop.f32.mrf.mxu0 }
 0x3c8   : > { %v1008_v12 = vmax.f32 %v966_v10, 0.0  ;;  %v986_v13 = vadd.f32 %v985_v11, %v942_v8 }
 0x3ca   : > { %v1009_v14 = vmax.f32 %v986_v13, 0.0  ;;  %1012 = vst.msk [vmem:[%s1765_s25] sm:$0xff] %vm1011_vm8, %v1008_v12 }
 0x3cc   : > { %1062 = vrot.lane.b32.xlu1 %v1009_v14, %s1472_s10  ;;  %1054 = vrot.lane.b32.xlu2 %v1009_v14, %s1477_s26  ;;  %s1483_s10 = smov 120  }
 0x3ce   : > { %v1005_v1 = vpop.f32.mrf.mxu1 }
 0x3cf   : > { %v1006_v15 = vadd.f32 %v1005_v1, %v942_v8 }
 0x3d1   : > { %v1010_v16 = vmax.f32 %v1006_v15, 0.0 }
 0x3d3   : > { %1081 = vrot.lane.b32.xlu0 %v1010_v16, %s1478_s30 }
 0x3d4   : > { %1074 = vrot.lane.b32.xlu1 %v1009_v14, %s1479_s9  ;;  %1070 = vrot.lane.b32.xlu2 %v1009_v14, %s1480_s11  ;;  %s1105_s9 = sshll.u32 %s1765_s25, 4  ;;  %s1106_s9 = int_to_ptr.vmem [resolvable:$true] %s1105_s9 }
 0x3db   : > { %1058 = vrot.lane.b32.xlu0 %v1009_v14, %s1470_s8  ;;  %s1488_s8 = smov 98  }
 0x3dc   : > { %1019 = vrot.lane.b32.xlu1 %v1008_v12, %s1481_s12  ;;  %1079 = vrot.lane.b32.xlu2 %v1009_v14, %s1478_s30 }
 0x3e3   : > { %1066 = vrot.lane.b32.xlu0 %v1009_v14, %s1482_s13 }
 0x3e4   : > { %1029 = vrot.lane.b32.xlu1 %v1008_v12, %s1483_s10  ;;  %1024 = vrot.lane.b32.xlu2 %v1008_v12, %s1484_s14 }
 0x3eb   : > { %1014 = vrot.lane.b32.xlu0 %v1008_v12, %s1469_s7  ;;  %s1215_s7 = sshll.u32 %s1540_s22, 4  ;;  %s1092_s22 = scalar_lea.sflag [#allocation8], %s245_s17 }
 0x3ec   : > { %1039 = vrot.lane.b32.xlu1 %v1008_v12, %s1485_s15  ;;  %1045 = vrot.lane.b32.xlu2 %v1008_v12, %s1486_s6  ;;  %s1103_s30 = scalar_lea.hbm %s1839_s5, %s1215_s7  ;;  %s1397_s15 = scalar_lea.hbm %s1839_s5, 32 }
 0x3ed   : > { %s1107_s11 = sshll.u32 %s1103_s30, 4  ;;  %s1108_s11 = int_to_ptr.hbm [resolvable:$true] %s1107_s11 }
 0x3ee   : > { %s1391_s12 = sshra.s32 %s1108_s11, 4  ;;  %s1392_s12 = int_to_ptr.hbm [resolvable:$true] %s1391_s12 }
 0x3ef   : > { %s1393_s13 = scalar_lea.hbm %s1392_s12, 16  ;;  %p1398_p3 = scmp.lt.s32.totalorder %s1392_s12, %s1839_s5 }
 0x3f0   : > { %p1394_p0 = scmp.ne.s32.totalorder %s1392_s12, %s1393_s13  ;;  %p1399_p4 = scmp.lt.s32.totalorder %s1397_s15, %s1393_s13 }
 0x3f2   : > { %p1395_p1 = pnand %p1394_p0, %p1557_p5  ;;  %p1400_p7 = por %p1399_p4, %p1398_p3 }
 0x3f3   : > { %1034 = vrot.lane.b32.xlu0 %v1008_v12, %s1487_s16 }
 0x3f4   : > { %1087 = vrot.lane.b32.xlu1 %v1010_v16, %s1488_s8  ;;  %p1396_p2 = pneg %p1395_p1 }
 0x3f6   : > { %p1401_p8 = pnand %p1400_p7, %p1396_p2 }
 0x3fb   : > { %1047 = vrot.lane.b32.xlu0 %v1009_v14, %s1486_s6 }
 0x426   : > { %v1055_v17 = vpop.permute.xlu2 %1054 }
 0x427   : > { %1057 = vst.msk [vmem:[%s1765_s25 + $0x8] sm:$0xff] %vm1011_vm8, %v1055_v17 }
 0x42e   : > { %v1071_v21 = vpop.permute.xlu2 %1070 }
 0x436   : > { %v1080_v24 = vpop.permute.xlu2 %1079 }
 0x43e   : > { %v1063_v18 = vpop.permute.xlu1 %1062  ;;  %v1025_v30 = vpop.permute.xlu2 %1024 }
 0x445   : > { %v1082_v19 = vpop.permute.xlu0 %1081 }
 0x446   : > { %v1075_v20 = vpop.permute.xlu1 %1074  ;;  %v1084_v27 = vsel %vm1083_vm3, %v1080_v24, %v1082_v19  ;;  %v1046_v33 = vpop.permute.xlu2 %1045 }
 0x44d   : > { %v1059_v22 = vpop.permute.xlu0 %1058 }
 0x44e   : > { %1061 = vst.msk [vmem:[%s1765_s25 + $0x8] sm:$0xff] %vm1017_vm13, %v1059_v22  ;;  %v1020_v23 = vpop.permute.xlu1 %1019 }
 0x44f   : > { %1065 = vst.msk [vmem:[%s1765_s25 + $0x8] sm:$0xff] %vm1022_vm10, %v1063_v18 }
 0x455   : > { %v1067_v25 = vpop.permute.xlu0 %1066 }
 0x456   : > { %1069 = vst.msk [vmem:[%s1765_s25 + $0x8] sm:$0xff] %vm1027_vm11, %v1067_v25  ;;  %v1030_v26 = vpop.permute.xlu1 %1029 }
 0x457   : > { %1073 = vst.msk [vmem:[%s1765_s25 + $0x8] sm:$0xff] %vm1032_vm12, %v1071_v21 }
 0x458   : > { %1077 = vst.msk [vmem:[%s1765_s25 + $0x8] sm:$0xff] %vm1037_vm6, %v1075_v20 }
 0x459   : > { %1086 = vst.msk [vmem:[%s1765_s25 + $0x8] sm:$0xff] %vm1042_vm7, %v1084_v27 }
 0x45d   : > { %v1015_v28 = vpop.permute.xlu0 %1014 }
 0x45e   : > { %1018 = vst.msk [vmem:[%s1765_s25] sm:$0xff] %vm1017_vm13, %v1015_v28  ;;  %v1040_v29 = vpop.permute.xlu1 %1039 }
 0x45f   : > { %1023 = vst.msk [vmem:[%s1765_s25] sm:$0xff] %vm1022_vm10, %v1020_v23 }
 0x460   : > { %1028 = vst.msk [vmem:[%s1765_s25] sm:$0xff] %vm1027_vm11, %v1025_v30 }
 0x461   : > { %1033 = vst.msk [vmem:[%s1765_s25] sm:$0xff] %vm1032_vm12, %v1030_v26 }
 0x465   : > { %v1035_v31 = vpop.permute.xlu0 %1034 }
 0x466   : > { %1038 = vst.msk [vmem:[%s1765_s25] sm:$0xff] %vm1037_vm6, %v1035_v31  ;;  %v1088_v32 = vpop.permute.xlu1 %1087 }
 0x467   : > { %1043 = vst.msk [vmem:[%s1765_s25] sm:$0xff] %vm1042_vm7, %v1040_v29 }
 0x468   : > { %1090 = vst.msk [vmem:[%s1765_s25 + $0x8] sm:$0xff] %vm1052_vm9, %v1088_v32 }
 0x46d   : > { %v1048_v34 = vpop.permute.xlu0 %1047 }
 0x46e   : > { %v1050_v35 = vsel %vm1049_vm14, %v1046_v33, %v1048_v34 }
 0x46f   : > { %1053 = vst.msk [vmem:[%s1765_s25] sm:$0xff] %vm1052_vm9, %v1050_v35 }
 0x470   : > { %1404 = shalt.err (!%p1401_p8)
}
 0x471   : > { %1224 = dma.vmem_to_hbm [thread:$0]  (%p1557_p5), %s1106_s9, 256, %s1108_s11, %s1092_s22  }
 0x472 PF: > { %p1241_p9 = scmp.ge.s32.totalorder %s1447_s21, 2  ;;  %s1119_s17 = sand.u32 1, %s1435_s18  }
 0x473   : > { %s1120_s25 = scalar_lea.sflag [#allocation8], %s1119_s17 }
 0x474   : > { %p1234_p10 = pnand %p1241_p9, %p1561_p6 }
 0x476   : > { %p1235_p11 = pneg %p1234_p10 }
 0x478   : > { %1430 = dma.done.wait (%p1235_p11), %s1120_s25, 256  }
 0x479   : > { %1432 = vsyncadd (%p1235_p11), %s1120_s25, 4294967040  ;;  %p17_p12 = scmp.ge.s32.totalorder %s1544_s24, 4   ;;  %s1852_s18 = smov %s1439_s19 }
 0x47a   : > { %s1853_s19 = smov %s1443_s20  ;;  %s1854_s20 = smov %s1555_s27 }
 0x47b   : > { %s1855_s21 = smov %s1544_s24  ;;  %19 = sbr.rel (!%p17_p12) target bundleno = 5 (0x5), region = 97 }
 0x480   :  { %1126 = vsyncpa [#allocation7], 1 }
 0x481   :  { %1128 = vsyncpa [#allocation7 + $0x1], 1 }
 0x482   :  { %1129 = vsyncpa [#allocation10], 1 }
 0x483   :  { %1130 = vsyncpa [#allocation8], 1 }
 0x484   :  { %1132 = vsyncpa [#allocation8 + $0x1], 1 }

</bundles_post_ra>
